<compile_context>
chip_gen: v5e
topology: v5e:2x2
jax: 0.10.0
libtpu: 0.0.40
codegen_flags: <defaults>
</compile_context>

<pallas_src>
import functools

import jax
import jax.numpy as jnp
from jax.experimental import pallas as pl
from jax.experimental.pallas import tpu as pltpu


def _round_up(x, m):
    return ((x + m - 1) // m) * m


def _embedding_kernel(ids_ref, w_ref, out_ref, *, codebook_dim, num_chunks):
    # ids_ref: (1, TN)        int32  -- lane-major tile of flattened token ids
    # w_ref:   (C*D, K)       bf16   -- stacked exact codebook chunks (hi..lo),
    #                                   constant block index -> VMEM-resident
    # out_ref: (D, TN)        f32    -- gathered embeddings, lane-dense (TN lanes)
    ids = ids_ref[...]                                            # (1, TN)
    k = w_ref.shape[1]
    tn = ids.shape[1]

    # Transposed one-hot: onehot_t[k, n] = (ids[n] == k); exact {0, 1} in bf16,
    # built with a sublane iota + cheap sublane broadcast of the lane-major ids.
    onehot_t = (jax.lax.broadcasted_iota(jnp.int32, (k, tn), 0) == ids)
    onehot_t = onehot_t.astype(w_ref.dtype)                       # (K, TN) bf16

    # Single-pass bf16 MXU matmul, f32 accumulation.  Each output element is a
    # single exact bf16 chunk value (one-hot selection), so no rounding occurs
    # inside the dot.
    prod = jnp.dot(w_ref[...], onehot_t,
                   preferred_element_type=jnp.float32)            # (C*D, TN)

    # Reconstruct f32 rows: hi + mid + lo (exact up to ~1 ulp of f32).
    acc = prod[0:codebook_dim, :]
    for c in range(1, num_chunks):
        acc = acc + prod[c * codebook_dim:(c + 1) * codebook_dim, :]

    out_ref[...] = acc.astype(out_ref.dtype)


def _split_exact_bf16(w, num_chunks):
    """Split an f32 array into `num_chunks` bf16 chunks whose sum is (near-)exact.

    Returns the chunks stacked along axis 0: (num_chunks * D, K) bf16.
    num_chunks=3 recovers essentially full f32 precision; num_chunks=1 is a
    plain bf16 cast (fast path).
    """
    chunks = []
    resid = w.astype(jnp.float32)
    for _ in range(num_chunks):
        c = resid.astype(jnp.bfloat16)
        chunks.append(c)
        resid = resid - c.astype(jnp.float32)
    return jnp.concatenate(chunks, axis=0)


@functools.partial(jax.jit, static_argnames=("tile_n", "num_chunks"))
def embedding_lookup(embed_id, weight, *, tile_n=2048, num_chunks=3):
    """EmbeddingEMA.forward: gather columns of `weight` (D, K) at `embed_id`.

    `weight` is in the native PyTorch buffer layout (codebook_dim, num_tokens);
    no transpose of the table is performed.  Returns embed_id.shape + (D,).
    For repeated calls with a fixed table, hoist `_split_exact_bf16(weight, 3)`
    out of the step function to avoid recomputing the split.
    """
    d, k = weight.shape

    ids_flat = embed_id.reshape(-1).astype(jnp.int32)
    n = ids_flat.shape[0]

    # --- tile selection ------------------------------------------------------
    # Lane axis of ids / output: multiple of 128, as large as reasonable so the
    # fixed per-grid-step overhead is amortized, bounded by the O(tile*K)
    # one-hot / iota temporaries (~8*K bytes per token column).
    tile = max(128, (min(int(tile_n), 4096) // 128) * 128)
    temp_cap = max(128, ((8 << 20) // (8 * k)) // 128 * 128)
    tile = min(tile, temp_cap)
    tile = min(tile, _round_up(n, 128))
    n_pad = _round_up(n, tile)

    # Pad ids (pad slots gather row 0 and are sliced off); lane-major (1, N).
    ids_row = jnp.pad(ids_flat, (0, n_pad - n)).reshape(1, n_pad)

    # Exact bf16 split of the codebook (computed once per call; cheap O(D*K)).
    w_chunks = _split_exact_bf16(weight, num_chunks)              # (C*D, K) bf16

    # --- VMEM budget (explicit, instead of the 16/32 MiB scoped defaults) ----
    cd = num_chunks * d
    per_step_temps = k * tile * 8 + cd * tile * 4        # iota+onehot+mask, prod
    buffers = 2 * (8 * tile * 4) + 2 * (cd * k * 2) + 2 * (d * tile * 4)
    vmem_limit = int(min(max(2 * (per_step_temps + buffers) + (8 << 20),
                             16 << 20), 64 << 20))

    grid = (n_pad // tile,)
    out_dn = pl.pallas_call(
        functools.partial(_embedding_kernel, codebook_dim=d,
                          num_chunks=num_chunks),
        out_shape=jax.ShapeDtypeStruct((d, n_pad), jnp.float32),
        grid_spec=pltpu.PrefetchScalarGridSpec(
            num_scalar_prefetch=0,
            grid=grid,
            in_specs=[
                # ids: lane-major (1, tile) int32 tile.
                pl.BlockSpec((1, tile), lambda i: (0, i)),
                # Full stacked codebook chunks, constant block index ->
                # DMA'd once and reused across all grid steps.
                pl.BlockSpec((cd, k), lambda i: (0, 0)),
            ],
            # Lane-dense output: D sublanes x tile lanes -> unmasked stores.
            out_specs=pl.BlockSpec((d, tile), lambda i: (0, i)),
        ),
        compiler_params=pltpu.CompilerParams(
            dimension_semantics=("parallel",),
            vmem_limit_bytes=vmem_limit,
        ),
    )(ids_row, w_chunks)

    # Tiny XLA transpose (D, N) -> (N, D) to match F.embedding's layout.
    # Channels-first consumers (typical in VQ-VAE decoders) can use out_dn
    # directly and skip this.
    out = out_dn.T[:n]
    return out.reshape(embed_id.shape + (d,))


def embedding_ema_forward(embed_id, weight, *, tile_n=2048, num_chunks=3):
    """EmbeddingEMA.forward: F.embedding(embed_id, weight.transpose(0, 1)).

    `weight` has the PyTorch buffer layout (codebook_dim, num_tokens) and is
    consumed in that native layout (no transpose of the table).
    """
    return embedding_lookup(embed_id, weight, tile_n=tile_n,
                            num_chunks=num_chunks)


if __name__ == "__main__":
    num_tokens = 512
    codebook_dim = 32

    key = jax.random.PRNGKey(0)
    k_w, k_id = jax.random.split(key)

    # Deterministic "randn" init matching torch.randn(codebook_dim, num_tokens).
    weight = jax.random.normal(k_w, (codebook_dim, num_tokens), dtype=jnp.float32)

    # Typical VQ usage: embed_id are (B, H, W) integer code indices.
    embed_id = jax.random.randint(k_id, (2, 16, 16), 0, num_tokens,
                                  dtype=jnp.int32)

    out = embedding_ema_forward(embed_id, weight)
    out = jax.block_until_ready(out)

    # Reference: F.embedding(embed_id, weight.T) == weight.T[embed_id]
    ref = jnp.take(weight.T, embed_id, axis=0)
    assert out.shape == embed_id.shape + (codebook_dim,), out.shape
    assert jnp.allclose(out, ref, rtol=1e-6, atol=1e-6), "mismatch vs reference"

    print("KERNEL_OK")
</pallas_src>

<mosaic_0001>
module attributes {stable_mosaic.version = 11 : i64} {
  func.func @_embedding_kernel(%arg0: i32, %arg1: memref<1x512xi32, #tpu.memory_space<vmem>>, %arg2: memref<96x512xbf16, #tpu.memory_space<vmem>>, %arg3: memref<32x512xf32, #tpu.memory_space<vmem>>) attributes {dimension_semantics = [#tpu.dimension_semantics<parallel>], iteration_bounds = array<i64: 1>, scalar_prefetch = 0 : i64, scratch_operands = 0 : i64, tpu.core_type = #tpu.core_type<tc>, window_params = [{transform_indices = @transform_0, window_bounds = array<i64: 1, 512>}, {pipeline_mode = #tpu.pipeline_mode<synchronous>, transform_indices = @transform_1, window_bounds = array<i64: 96, 512>}, {transform_indices = @transform_2, window_bounds = array<i64: 32, 512>}]} {
    %c0 = arith.constant 0 : index
    %c0_0 = arith.constant 0 : index
    %0 = vector.load %arg1[%c0, %c0_0] : memref<1x512xi32, #tpu.memory_space<vmem>>, vector<1x512xi32>
    %1 = tpu.iota {dimensions = array<i32: 0>} : vector<512x512xi32>
    %2 = vector.broadcast %0 : vector<1x512xi32> to vector<512x512xi32>
    %3 = arith.cmpi eq, %1, %2 : vector<512x512xi32>
    %4 = arith.extui %3 : vector<512x512xi1> to vector<512x512xi32>
    %5 = arith.sitofp %4 : vector<512x512xi32> to vector<512x512xf32>
    %6 = arith.truncf %5 : vector<512x512xf32> to vector<512x512xbf16>
    %c0_1 = arith.constant 0 : index
    %c0_2 = arith.constant 0 : index
    %7 = vector.load %arg2[%c0_1, %c0_2] : memref<96x512xbf16, #tpu.memory_space<vmem>>, vector<96x512xbf16>
    %cst = arith.constant dense<0.000000e+00> : vector<96x512xf32>
    %8 = tpu.matmul %7, %6, %cst {dimension_numbers = #tpu.dot_dimension_numbers<[1], [0], [0], [1], [0, 0, 1, 1], [], []>} : vector<96x512xbf16>, vector<512x512xbf16>, vector<96x512xf32> -> vector<96x512xf32>
    %9 = vector.extract_strided_slice %8 {offsets = [0, 0], sizes = [32, 512], strides = [1, 1]} : vector<96x512xf32> to vector<32x512xf32>
    %10 = vector.extract_strided_slice %8 {offsets = [32, 0], sizes = [32, 512], strides = [1, 1]} : vector<96x512xf32> to vector<32x512xf32>
    %11 = arith.addf %9, %10 : vector<32x512xf32>
    %12 = vector.extract_strided_slice %8 {offsets = [64, 0], sizes = [32, 512], strides = [1, 1]} : vector<96x512xf32> to vector<32x512xf32>
    %13 = arith.addf %11, %12 : vector<32x512xf32>
    %c0_3 = arith.constant 0 : index
    %c0_4 = arith.constant 0 : index
    %14 = vector.load %arg3[%c0_3, %c0_4] : memref<32x512xf32, #tpu.memory_space<vmem>>, vector<32x512xf32>
    tpu.vector_store %arg3[%c0_3, %c0_4], %13 {strides = array<i32>} : memref<32x512xf32, #tpu.memory_space<vmem>>, vector<32x512xf32>,
    return
  }
  func.func @transform_0(%arg0: i32) -> (i32, i32) {
    %c0_i32 = arith.constant 0 : i32
    %c0_i32_0 = arith.constant 0 : i32
    return %c0_i32, %arg0 : i32, i32
  }
  func.func @transform_1(%arg0: i32) -> (i32, i32) {
    %c0_i32 = arith.constant 0 : i32
    %c0_i32_0 = arith.constant 0 : i32
    %c0_i32_1 = arith.constant 0 : i32
    return %c0_i32, %c0_i32_0 : i32, i32
  }
  func.func @transform_2(%arg0: i32) -> (i32, i32) {
    %c0_i32 = arith.constant 0 : i32
    %c0_i32_0 = arith.constant 0 : i32
    return %c0_i32, %arg0 : i32, i32
  }
}

</mosaic_0001>

<bundles_post_ra>
// kernel: embedding_lookup.1
= control target key start
LH: loop header
LB: loop body
LE: loop exit
PB: predicated region body
PF: predicated region fallthrough
CT: control target
= control target key end

     0   :  { %v12_v0 = vlaneseq  ;;  %v3881_v12 = vmov 1.0|1.0   ;;  %s3858_s0 = inlined_call_operand.vmem [shape: s32[1,512], index: 0, kind: input, shape index: {}]   ;;  %s3859_s1 = inlined_call_operand.vmem [shape: bf16[96,512], index: 1, kind: input, shape index: {}]   ;;  %s3860_s2 = inlined_call_operand.vmem [shape: f32[32,512], index: 2, kind: output, shape index: {}]  }
   0x1   :  { %v2450_v1 = vld [vmem:[%s3858_s0] sm:$0xf]  ;;  %v2407_v62 = vld [vmem:[%s3859_s1 + $0xc] sm:$0xf0]  ;;  %v2405_v63 = vld [vmem:[%s3859_s1 + $0x4] sm:$0xf] }
   0x2   :  { %v2452_v2 = vshrl.u32 %v12_v0, 7  ;;  %v2455_v3 = vperm.slane %v2450_v1, 0  ;;  %v2055_v61 = vld [vmem:[%s3859_s1] sm:$0xf]  ;;  %v2057_v0 = vld [vmem:[%s3859_s1 + $0x10] sm:$0xf0] }
   0x4   :  { %3958 = vst [vmem:[#allocation2_spill] sm:$0xff] %v2452_v2  ;;  %v2458_v4 = vadd.s32 112, %v2452_v2  ;;  %v2461_v5 = vadd.s32 120, %v2452_v2  ;;  %v2464_v6 = vadd.s32 240, %v2452_v2  ;;  %v2467_v7 = vadd.s32 248, %v2452_v2 }
   0x5   :  { %v2470_v8 = vadd.s32 368, %v2452_v2  ;;  %v2473_v9 = vadd.s32 376, %v2452_v2  ;;  %v2476_v10 = vadd.s32 496, %v2452_v2  ;;  %v2479_v11 = vadd.s32 504, %v2452_v2 }
   0x6   :  { %vm137_vm0 = vcmp.eq.s32.totalorder %v2458_v4, %v2455_v3  ;;  %vm141_vm1 = vcmp.eq.s32.totalorder %v2461_v5, %v2455_v3  ;;  %vm201_vm2 = vcmp.eq.s32.totalorder %v2464_v6, %v2455_v3  ;;  %vm205_vm3 = vcmp.eq.s32.totalorder %v2467_v7, %v2455_v3 }
   0x7   :  { %vm2149_vm4 = vmpackc.low %vm141_vm1, %vm137_vm0  ;;  %vm265_vm5 = vcmp.eq.s32.totalorder %v2470_v8, %v2455_v3  ;;  %vm269_vm6 = vcmp.eq.s32.totalorder %v2473_v9, %v2455_v3  ;;  %vm329_vm7 = vcmp.eq.s32.totalorder %v2476_v10, %v2455_v3  ;;  %vm333_vm8 = vcmp.eq.s32.totalorder %v2479_v11, %v2455_v3 }
   0x8   :  { %2150 = vmatpush.bf16.msk.msra.mxu0 %vm2149_vm4, %v3881_v12  ;;  %vm2165_vm9 = vmpackc.low %vm205_vm3, %vm201_vm2  ;;  %v2499_v13 = vadd.s32 96, %v2452_v2  ;;  %v2502_v14 = vadd.s32 104, %v2452_v2  ;;  %v2505_v15 = vadd.s32 224, %v2452_v2  ;;  %v2508_v16 = vadd.s32 232, %v2452_v2 }
   0x9   :  { %2166 = vmatpush.bf16.msk.msra.mxu1 %vm2165_vm9, %v3881_v12  ;;  %vm2181_vm10 = vmpackc.low %vm269_vm6, %vm265_vm5  ;;  %v2512_v17 = vadd.s32 352, %v2452_v2  ;;  %v2515_v18 = vadd.s32 360, %v2452_v2  ;;  %v2518_v19 = vadd.s32 480, %v2452_v2  ;;  %v2521_v20 = vadd.s32 488, %v2452_v2 }
   0xa   :  { %2182 = vmatpush.bf16.msk.msra.mxu2 %vm2181_vm10, %v3881_v12  ;;  %vm2197_vm11 = vmpackc.low %vm333_vm8, %vm329_vm7  ;;  %vm129_vm12 = vcmp.eq.s32.totalorder %v2499_v13, %v2455_v3  ;;  %vm133_vm13 = vcmp.eq.s32.totalorder %v2502_v14, %v2455_v3  ;;  %vm193_vm14 = vcmp.eq.s32.totalorder %v2505_v15, %v2455_v3  ;;  %vm197_vm15 = vcmp.eq.s32.totalorder %v2508_v16, %v2455_v3 }
   0xb   :  { %3959 = vst [vmem:[#allocation3_spill] sm:$0xff] %v2512_v17  ;;  %2198 = vmatpush.bf16.msk.msra.mxu3 %vm2197_vm11, %v3881_v12  ;;  %vm2151_vm0 = vmpackc.low %vm133_vm13, %vm129_vm12  ;;  %vm257_vm1 = vcmp.eq.s32.totalorder %v2512_v17, %v2455_v3  ;;  %vm261_vm2 = vcmp.eq.s32.totalorder %v2515_v18, %v2455_v3  ;;  %vm321_vm3 = vcmp.eq.s32.totalorder %v2518_v19, %v2455_v3  ;;  %v2549_v21 = vadd.s32 80, %v2452_v2 }
   0xc   :  { %3960 = vst [vmem:[#allocation4_spill] sm:$0xff] %v2515_v18  ;;  %vm325_vm4 = vcmp.eq.s32.totalorder %v2521_v20, %v2455_v3  ;;  %2152 = vmatpush.bf16.msk.msra.mxu0 %vm2151_vm0, %v3881_v12  ;;  %vm2167_vm5 = vmpackc.low %vm197_vm15, %vm193_vm14  ;;  %v2552_v22 = vadd.s32 88, %v2452_v2  ;;  %v2555_v23 = vadd.s32 208, %v2452_v2  ;;  %v2558_v24 = vadd.s32 216, %v2452_v2 }
   0xd   :  { %3961 = vst [vmem:[#allocation5_spill] sm:$0xff] %v2518_v19  ;;  %2168 = vmatpush.bf16.msk.msra.mxu1 %vm2167_vm5, %v3881_v12  ;;  %vm2183_vm6 = vmpackc.low %vm261_vm2, %vm257_vm1  ;;  %v2562_v25 = vadd.s32 336, %v2452_v2  ;;  %v2565_v26 = vadd.s32 344, %v2452_v2  ;;  %v2568_v27 = vadd.s32 464, %v2452_v2  ;;  %v2571_v28 = vadd.s32 472, %v2452_v2 }
   0xe   :  { %3962 = vst [vmem:[#allocation6_spill] sm:$0xff] %v2521_v20  ;;  %2184 = vmatpush.bf16.msk.msra.mxu2 %vm2183_vm6, %v3881_v12  ;;  %vm2199_vm7 = vmpackc.low %vm325_vm4, %vm321_vm3  ;;  %vm121_vm8 = vcmp.eq.s32.totalorder %v2549_v21, %v2455_v3  ;;  %vm125_vm9 = vcmp.eq.s32.totalorder %v2552_v22, %v2455_v3  ;;  %vm185_vm10 = vcmp.eq.s32.totalorder %v2555_v23, %v2455_v3  ;;  %v2596_v29 = vadd.s32 64, %v2452_v2 }
   0xf   :  { %vm189_vm11 = vcmp.eq.s32.totalorder %v2558_v24, %v2455_v3  ;;  %2200 = vmatpush.bf16.msk.msra.mxu3 %vm2199_vm7, %v3881_v12  ;;  %vm2153_vm12 = vmpackc.low %vm125_vm9, %vm121_vm8  ;;  %vm249_vm13 = vcmp.eq.s32.totalorder %v2562_v25, %v2455_v3  ;;  %vm253_vm14 = vcmp.eq.s32.totalorder %v2565_v26, %v2455_v3  ;;  %vm313_vm15 = vcmp.eq.s32.totalorder %v2568_v27, %v2455_v3 }
  0x10   :  { %vm317_vm0 = vcmp.eq.s32.totalorder %v2571_v28, %v2455_v3  ;;  %2154 = vmatpush.bf16.msk.msra.mxu0 %vm2153_vm12, %v3881_v12  ;;  %vm2169_vm1 = vmpackc.low %vm189_vm11, %vm185_vm10  ;;  %v2599_v30 = vadd.s32 72, %v2452_v2  ;;  %v2602_v31 = vadd.s32 192, %v2452_v2  ;;  %v2605_v32 = vadd.s32 200, %v2452_v2 }
  0x11   :  { %2170 = vmatpush.bf16.msk.msra.mxu1 %vm2169_vm1, %v3881_v12  ;;  %vm2185_vm2 = vmpackc.low %vm253_vm14, %vm249_vm13  ;;  %v2609_v33 = vadd.s32 320, %v2452_v2  ;;  %v2612_v34 = vadd.s32 328, %v2452_v2  ;;  %v2615_v35 = vadd.s32 448, %v2452_v2  ;;  %v2618_v36 = vadd.s32 456, %v2452_v2 }
  0x12   :  { %3963 = vst [vmem:[#allocation7_spill] sm:$0xff] %v2602_v31  ;;  %2186 = vmatpush.bf16.msk.msra.mxu2 %vm2185_vm2, %v3881_v12  ;;  %vm2201_vm3 = vmpackc.low %vm317_vm0, %vm313_vm15  ;;  %vm113_vm4 = vcmp.eq.s32.totalorder %v2596_v29, %v2455_v3  ;;  %vm117_vm5 = vcmp.eq.s32.totalorder %v2599_v30, %v2455_v3  ;;  %vm177_vm6 = vcmp.eq.s32.totalorder %v2602_v31, %v2455_v3  ;;  %v2643_v37 = vadd.s32 48, %v2452_v2 }
  0x13   :  { %vm181_vm7 = vcmp.eq.s32.totalorder %v2605_v32, %v2455_v3  ;;  %2202 = vmatpush.bf16.msk.msra.mxu3 %vm2201_vm3, %v3881_v12  ;;  %vm2155_vm8 = vmpackc.low %vm117_vm5, %vm113_vm4  ;;  %vm241_vm9 = vcmp.eq.s32.totalorder %v2609_v33, %v2455_v3  ;;  %vm245_vm10 = vcmp.eq.s32.totalorder %v2612_v34, %v2455_v3  ;;  %vm305_vm11 = vcmp.eq.s32.totalorder %v2615_v35, %v2455_v3 }
  0x14   :  { %vm309_vm12 = vcmp.eq.s32.totalorder %v2618_v36, %v2455_v3  ;;  %2156 = vmatpush.bf16.msk.msra.mxu0 %vm2155_vm8, %v3881_v12  ;;  %vm2171_vm13 = vmpackc.low %vm181_vm7, %vm177_vm6  ;;  %3964 = vst [vmem:[#allocation8_spill] sm:$0xff] %v2643_v37  ;;  %v2646_v38 = vadd.s32 56, %v2452_v2  ;;  %v2649_v39 = vadd.s32 176, %v2452_v2  ;;  %v2652_v40 = vadd.s32 184, %v2452_v2 }
  0x15   :  { %2172 = vmatpush.bf16.msk.msra.mxu1 %vm2171_vm13, %v3881_v12  ;;  %vm2187_vm14 = vmpackc.low %vm245_vm10, %vm241_vm9  ;;  %v2656_v41 = vadd.s32 304, %v2452_v2  ;;  %v2659_v42 = vadd.s32 312, %v2452_v2  ;;  %v2662_v43 = vadd.s32 432, %v2452_v2  ;;  %v2665_v44 = vadd.s32 440, %v2452_v2 }
  0x16   :  { %3965 = vst [vmem:[#allocation9_spill] sm:$0xff] %v2646_v38  ;;  %2188 = vmatpush.bf16.msk.msra.mxu2 %vm2187_vm14, %v3881_v12  ;;  %vm2203_vm15 = vmpackc.low %vm309_vm12, %vm305_vm11  ;;  %vm105_vm0 = vcmp.eq.s32.totalorder %v2643_v37, %v2455_v3  ;;  %vm109_vm1 = vcmp.eq.s32.totalorder %v2646_v38, %v2455_v3  ;;  %vm169_vm2 = vcmp.eq.s32.totalorder %v2649_v39, %v2455_v3  ;;  %v2690_v45 = vadd.s32 32, %v2452_v2 }
  0x17   :  { %3966 = vst [vmem:[#allocation10_spill] sm:$0xff] %v2649_v39  ;;  %vm173_vm3 = vcmp.eq.s32.totalorder %v2652_v40, %v2455_v3  ;;  %2204 = vmatpush.bf16.msk.msra.mxu3 %vm2203_vm15, %v3881_v12  ;;  %vm2157_vm4 = vmpackc.low %vm109_vm1, %vm105_vm0  ;;  %vm233_vm5 = vcmp.eq.s32.totalorder %v2656_v41, %v2455_v3  ;;  %vm237_vm6 = vcmp.eq.s32.totalorder %v2659_v42, %v2455_v3  ;;  %v2693_v46 = vadd.s32 40, %v2452_v2 }
  0x18   :  { %3967 = vst [vmem:[#allocation11_spill] sm:$0xff] %v2652_v40  ;;  %vm297_vm7 = vcmp.eq.s32.totalorder %v2662_v43, %v2455_v3  ;;  %vm301_vm8 = vcmp.eq.s32.totalorder %v2665_v44, %v2455_v3  ;;  %2158 = vmatpush.bf16.msk.msra.mxu0 %vm2157_vm4, %v3881_v12  ;;  %vm2173_vm9 = vmpackc.low %vm173_vm3, %vm169_vm2  ;;  %v2696_v47 = vadd.s32 160, %v2452_v2  ;;  %v2699_v48 = vadd.s32 168, %v2452_v2 }
  0x19   :  { %3968 = vst [vmem:[#allocation12_spill] sm:$0xff] %v2656_v41  ;;  %2174 = vmatpush.bf16.msk.msra.mxu1 %vm2173_vm9, %v3881_v12  ;;  %vm2189_vm10 = vmpackc.low %vm237_vm6, %vm233_vm5  ;;  %v2703_v49 = vadd.s32 288, %v2452_v2  ;;  %v2706_v50 = vadd.s32 296, %v2452_v2  ;;  %v2709_v51 = vadd.s32 416, %v2452_v2  ;;  %v2712_v52 = vadd.s32 424, %v2452_v2 }
  0x1a   :  { %3969 = vst [vmem:[#allocation13_spill] sm:$0xff] %v2659_v42  ;;  %2190 = vmatpush.bf16.msk.msra.mxu2 %vm2189_vm10, %v3881_v12  ;;  %vm2205_vm11 = vmpackc.low %vm301_vm8, %vm297_vm7  ;;  %vm97_vm12 = vcmp.eq.s32.totalorder %v2690_v45, %v2455_v3  ;;  %vm101_vm13 = vcmp.eq.s32.totalorder %v2693_v46, %v2455_v3  ;;  %vm161_vm14 = vcmp.eq.s32.totalorder %v2696_v47, %v2455_v3  ;;  %v2737_v53 = vadd.s32 16, %v2452_v2 }
  0x1b   :  { %3970 = vst [vmem:[#allocation14_spill] sm:$0xff] %v2662_v43  ;;  %vm165_vm15 = vcmp.eq.s32.totalorder %v2699_v48, %v2455_v3  ;;  %2206 = vmatpush.bf16.msk.msra.mxu3 %vm2205_vm11, %v3881_v12  ;;  %vm2159_vm0 = vmpackc.low %vm101_vm13, %vm97_vm12  ;;  %vm225_vm1 = vcmp.eq.s32.totalorder %v2703_v49, %v2455_v3  ;;  %vm229_vm2 = vcmp.eq.s32.totalorder %v2706_v50, %v2455_v3  ;;  %v2740_v54 = vadd.s32 24, %v2452_v2 }
  0x1c   :  { %3971 = vst [vmem:[#allocation15_spill] sm:$0xff] %v2665_v44  ;;  %vm289_vm3 = vcmp.eq.s32.totalorder %v2709_v51, %v2455_v3  ;;  %vm293_vm4 = vcmp.eq.s32.totalorder %v2712_v52, %v2455_v3  ;;  %2160 = vmatpush.bf16.msk.msra.mxu0 %vm2159_vm0, %v3881_v12  ;;  %vm2175_vm5 = vmpackc.low %vm165_vm15, %vm161_vm14  ;;  %v2743_v55 = vadd.s32 144, %v2452_v2  ;;  %v2746_v56 = vadd.s32 152, %v2452_v2 }
  0x1d   :  { %3972 = vst [vmem:[#allocation16_spill] sm:$0xff] %v2690_v45  ;;  %2176 = vmatpush.bf16.msk.msra.mxu1 %vm2175_vm5, %v3881_v12  ;;  %vm2191_vm6 = vmpackc.low %vm229_vm2, %vm225_vm1  ;;  %v2750_v57 = vadd.s32 272, %v2452_v2  ;;  %v2753_v58 = vadd.s32 280, %v2452_v2  ;;  %v2756_v59 = vadd.s32 400, %v2452_v2  ;;  %v2759_v60 = vadd.s32 408, %v2452_v2 }
  0x1e   :  { %3973 = vst [vmem:[#allocation17_spill] sm:$0xff] %v2693_v46  ;;  %2192 = vmatpush.bf16.msk.msra.mxu2 %vm2191_vm6, %v3881_v12  ;;  %vm2207_vm7 = vmpackc.low %vm293_vm4, %vm289_vm3  ;;  %vm89_vm8 = vcmp.eq.s32.totalorder %v2737_v53, %v2455_v3  ;;  %vm93_vm9 = vcmp.eq.s32.totalorder %v2740_v54, %v2455_v3  ;;  %vm153_vm10 = vcmp.eq.s32.totalorder %v2743_v55, %v2455_v3  ;;  %v2408_v46 = vld [vmem:[%s3859_s1 + $0x14] sm:$0xf0] }
  0x1f   :  { %3974 = vst [vmem:[#allocation18_spill] sm:$0xff] %v2696_v47  ;;  %vm157_vm11 = vcmp.eq.s32.totalorder %v2746_v56, %v2455_v3  ;;  %2208 = vmatpush.bf16.msk.msra.mxu3 %vm2207_vm7, %v3881_v12  ;;  %vm2161_vm12 = vmpackc.low %vm93_vm9, %vm89_vm8  ;;  %vm217_vm13 = vcmp.eq.s32.totalorder %v2750_v57, %v2455_v3  ;;  %vm221_vm14 = vcmp.eq.s32.totalorder %v2753_v58, %v2455_v3  ;;  %v2823_v47 = vadd.s32 392, %v2452_v2 }
  0x20   :  { %3975 = vst [vmem:[#allocation19_spill] sm:$0xff] %v2699_v48  ;;  %vm281_vm15 = vcmp.eq.s32.totalorder %v2756_v59, %v2455_v3  ;;  %vm285_vm0 = vcmp.eq.s32.totalorder %v2759_v60, %v2455_v3  ;;  %2162 = vmatpush.bf16.msk.msra.mxu0 %vm2161_vm12, %v3881_v12  ;;  %vm2177_vm1 = vmpackc.low %vm157_vm11, %vm153_vm10  ;;  %vm81_vm2 = vcmp.eq.s32.totalorder %v2452_v2, %v2455_v3  ;;  %v2820_v48 = vadd.s32 384, %v2452_v2 }
  0x21   :  { %3976 = vst [vmem:[#allocation20_spill] sm:$0xff] %v2703_v49  ;;  %2178 = vmatpush.bf16.msk.msra.mxu1 %vm2177_vm1, %v3881_v12  ;;  %vm2193_vm3 = vmpackc.low %vm221_vm14, %vm217_vm13  ;;  %v2841_v45 = vor.u32 %v2407_v62, %v2055_v61  ;;  %vm277_vm12 = vcmp.eq.s32.totalorder %v2823_v47, %v2455_v3  ;;  %v2862_v61 = vor.u32 %v2405_v63, %v2057_v0  ;;  %v2865_v62 = vperm.slane %v2450_v1, 1  ;;  %v2412_v63 = vld [vmem:[%s3859_s1 + $0x34] sm:$0xf0] }
  0x22   :  { %3977 = vst [vmem:[#allocation21_spill] sm:$0xff] %v2706_v50  ;;  %2194 = vmatpush.bf16.msk.msra.mxu2 %vm2193_vm3, %v3881_v12  ;;  %vm2209_vm4 = vmpackc.low %vm285_vm0, %vm281_vm15  ;;  %v2406_v12 = vld [vmem:[%s3859_s1 + $0xc] sm:$0xf]  ;;  %vm273_vm11 = vcmp.eq.s32.totalorder %v2820_v48, %v2455_v3 }
  0x23   :  { %3978 = vst [vmem:[#allocation22_spill] sm:$0xff] %v2709_v51  ;;  %vm2211_vm15 = vmpackc.low %vm277_vm12, %vm273_vm11  ;;  %vm266_vm0 = vcmp.eq.s32.totalorder %v2470_v8, %v2865_v62  ;;  %vm270_vm1 = vcmp.eq.s32.totalorder %v2473_v9, %v2865_v62  ;;  %vm334_vm3 = vcmp.eq.s32.totalorder %v2479_v11, %v2865_v62  ;;  %vm262_vm11 = vcmp.eq.s32.totalorder %v2515_v18, %v2865_v62 }
  0x24   :  { %3979 = vst [vmem:[#allocation23_spill] sm:$0xff] %v2712_v52 }
  0x25   :  { %3980 = vst [vmem:[#allocation24_spill] sm:$0xff] %v2737_v53  ;;  %v2063_v53 = vld [vmem:[%s3859_s1 + $0x8] sm:$0xf] }
  0x26   :  { %3981 = vst [vmem:[#allocation25_spill] sm:$0xff] %v2740_v54  ;;  %v2807_v54 = vadd.s32 136, %v2452_v2 }
  0x27   :  { %3982 = vst [vmem:[#allocation26_spill] sm:$0xff] %v2743_v55  ;;  %v2804_v55 = vadd.s32 128, %v2452_v2 }
  0x28   :  { %3983 = vst [vmem:[#allocation27_spill] sm:$0xff] %v2746_v56  ;;  %v2799_v56 = vadd.s32 8, %v2452_v2  ;;  %vm149_vm7 = vcmp.eq.s32.totalorder %v2807_v54, %v2455_v3 }
  0x29   :  { %3984 = vst [vmem:[#allocation28_spill] sm:$0xff] %v2750_v57  ;;  %v2817_v57 = vadd.s32 264, %v2452_v2  ;;  %vm145_vm6 = vcmp.eq.s32.totalorder %v2804_v55, %v2455_v3 }
  0x2a   :  { %3985 = vst [vmem:[#allocation29_spill] sm:$0xff] %v2753_v58  ;;  %v2814_v58 = vadd.s32 256, %v2452_v2  ;;  %vm85_vm5 = vcmp.eq.s32.totalorder %v2799_v56, %v2455_v3  ;;  %vm2179_vm13 = vmpackc.low %vm149_vm7, %vm145_vm6  ;;  %vm142_vm6 = vcmp.eq.s32.totalorder %v2461_v5, %v2865_v62  ;;  %vm202_vm7 = vcmp.eq.s32.totalorder %v2464_v6, %v2865_v62 }
  0x2b   :  { %3986 = vst [vmem:[#allocation30_spill] sm:$0xff] %v2756_v59  ;;  %v3995_v59 = vmov 1.0|1.0   ;;  %vm2163_vm8 = vmpackc.low %vm85_vm5, %vm81_vm2  ;;  %vm213_vm10 = vcmp.eq.s32.totalorder %v2817_v57, %v2455_v3  ;;  %vm330_vm2 = vcmp.eq.s32.totalorder %v2476_v10, %v2865_v62  ;;  %vm138_vm5 = vcmp.eq.s32.totalorder %v2458_v4, %v2865_v62 }
  0x2c   :  { %3987 = vst [vmem:[#allocation31_spill] sm:$0xff] %v2759_v60  ;;  %v2065_v60 = vld [vmem:[%s3859_s1 + $0x18] sm:$0xf0]  ;;  %2210 = vmatpush.bf16.msk.msra.mxu3 %vm2209_vm4, %v3995_v59  ;;  %vm209_vm9 = vcmp.eq.s32.totalorder %v2814_v58, %v2455_v3  ;;  %2164 = vmatpush.bf16.msk.msra.mxu0 %vm2163_vm8, %v3995_v59  ;;  %vm2245_vm4 = vmpackc.low %vm270_vm1, %vm266_vm0  ;;  %vm130_vm0 = vcmp.eq.s32.totalorder %v2499_v13, %v2865_v62  ;;  %v2071_v3 = vld [vmem:[%s3859_s1 + $0x20] sm:$0xf] }
  0x2d   :  { %3988 = vst [vmem:[#allocation32_spill] sm:$0xff] %v2799_v56  ;;  %2180 = vmatpush.bf16.msk.msra.mxu1 %vm2179_vm13, %v3995_v59  ;;  %vm2195_vm14 = vmpackc.low %vm213_vm10, %vm209_vm9  ;;  %vm206_vm9 = vcmp.eq.s32.totalorder %v2467_v7, %v2865_v62  ;;  %vm258_vm10 = vcmp.eq.s32.totalorder %v2512_v17, %v2865_v62  ;;  %vm322_vm13 = vcmp.eq.s32.totalorder %v2518_v19, %v2865_v62 }
  0x2e   :  { %3989 = vst [vmem:[#allocation33_spill] sm:$0xff] %v2804_v55  ;;  %v2870_v55 = vor.u32 %v2406_v12, %v2065_v60  ;;  %2196 = vmatpush.bf16.msk.msra.mxu2 %vm2195_vm14, %v3995_v59  ;;  %vm2261_vm8 = vmpackc.low %vm334_vm3, %vm330_vm2  ;;  %vm326_vm14 = vcmp.eq.s32.totalorder %v2521_v20, %v2865_v62  ;;  %vm134_vm1 = vcmp.eq.s32.totalorder %v2502_v14, %v2865_v62  ;;  %v2411_v12 = vld [vmem:[%s3859_s1 + $0x2c] sm:$0xf0]  ;;  %v2079_v60 = vld [vmem:[%s3859_s1 + $0x28] sm:$0xf] }
  0x2f   :  { %3990 = vst [vmem:[#allocation34_spill] sm:$0xff] %v2807_v54  ;;  %v2868_v54 = vor.u32 %v2408_v46, %v2063_v53  ;;  %1129 = vmatmul.bf16.vlgmr.msra.gmra.mxu0 %v2841_v45  ;;  %vm2213_vm12 = vmpackc.low %vm142_vm6, %vm138_vm5  ;;  %vm194_vm3 = vcmp.eq.s32.totalorder %v2505_v15, %v2865_v62  ;;  %vm250_vm6 = vcmp.eq.s32.totalorder %v2562_v25, %v2865_v62  ;;  %v2409_v46 = vld [vmem:[%s3859_s1 + $0x24] sm:$0xf]  ;;  %v2073_v53 = vld [vmem:[%s3859_s1 + $0x30] sm:$0xf0] }
  0x30   :  { %3991 = vst [vmem:[#allocation35_spill] sm:$0xff] %v2814_v58  ;;  %2212 = vmatpush.bf16.msk.msra.mxu3 %vm2211_vm15, %v3995_v59  ;;  %1168 = vmatmul.bf16.vlgmr.msra.gmra.mxu1 %v2862_v61  ;;  %vm2229_vm15 = vmpackc.low %vm206_vm9, %vm202_vm7  ;;  %vm254_vm7 = vcmp.eq.s32.totalorder %v2565_v26, %v2865_v62  ;;  %vm314_vm9 = vcmp.eq.s32.totalorder %v2568_v27, %v2865_v62 }
  0x31   :  { %3992 = vst [vmem:[#allocation36_spill] sm:$0xff] %v2817_v57  ;;  %1207 = vmatmul.bf16.vlgmr.msra.gmra.mxu2 %v2868_v54  ;;  %2214 = vmatpush.bf16.msk.msrb.mxu0 %vm2213_vm12, %v3995_v59  ;;  %vm2247_vm2 = vmpackc.low %vm262_vm11, %vm258_vm10  ;;  %vm318_vm10 = vcmp.eq.s32.totalorder %v2571_v28, %v2865_v62  ;;  %vm122_vm12 = vcmp.eq.s32.totalorder %v2549_v21, %v2865_v62 }
  0x32   :  { %3993 = vst [vmem:[#allocation37_spill] sm:$0xff] %v2820_v48  ;;  %2246 = vmatpush.bf16.msk.msrb.mxu2 %vm2245_vm4, %v3995_v59  ;;  %2230 = vmatpush.bf16.msk.msrb.mxu1 %vm2229_vm15, %v3995_v59  ;;  %vm198_vm4 = vcmp.eq.s32.totalorder %v2508_v16, %v2865_v62  ;;  %vm2263_vm5 = vmpackc.low %vm326_vm14, %vm322_vm13  ;;  %vm126_vm13 = vcmp.eq.s32.totalorder %v2552_v22, %v2865_v62 }
  0x33   :  { %3994 = vst [vmem:[#allocation38_spill] sm:$0xff] %v2823_v47  ;;  %1246 = vmatmul.bf16.vlgmr.msra.gmra.mxu3 %v2870_v55  ;;  %vm2231_vm11 = vmpackc.low %vm198_vm4, %vm194_vm3  ;;  %vm186_vm15 = vcmp.eq.s32.totalorder %v2555_v23, %v2865_v62  ;;  %vm246_vm3 = vcmp.eq.s32.totalorder %v2612_v34, %v2865_v62  ;;  %v2976_v0 = vor.u32 %v2411_v12, %v2071_v3 }
  0x34   :  { %3996 = vst [vmem:[#allocation39_spill] sm:$0xff] %v2868_v54  ;;  %2262 = vmatpush.bf16.msk.msrb.mxu3 %vm2261_vm8, %v3995_v59  ;;  %vm2215_vm8 = vmpackc.low %vm134_vm1, %vm130_vm0  ;;  %vm190_vm0 = vcmp.eq.s32.totalorder %v2558_v24, %v2865_v62  ;;  %v2081_v54 = vld [vmem:[%s3859_s1 + $0x38] sm:$0xf0]  ;;  %v2995_v3 = vor.u32 %v2409_v46, %v2073_v53  ;;  %v3004_v12 = vor.u32 %v2412_v63, %v2079_v60  ;;  %v2413_v46 = vld [vmem:[%s3859_s1 + $0x44] sm:$0xf] }
  0x35   :  { %3997 = vst [vmem:[#allocation40_spill] sm:$0xff] %v2870_v55  ;;  %2216 = vmatpush.bf16.msk.msrb.mxu0 %vm2215_vm8, %v3995_v59  ;;  %vm2249_vm14 = vmpackc.low %vm254_vm7, %vm250_vm6  ;;  %vm310_vm6 = vcmp.eq.s32.totalorder %v2618_v36, %v2865_v62  ;;  %vm114_vm8 = vcmp.eq.s32.totalorder %v2596_v29, %v2865_v62  ;;  %v2410_v55 = vld [vmem:[%s3859_s1 + $0x2c] sm:$0xf]  ;;  %v2089_v53 = vld [vmem:[%s3859_s1 + $0x50] sm:$0xf0] }
  0x36   :  { %2248 = vmatpush.bf16.msk.msrb.mxu2 %vm2247_vm2, %v3995_v59  ;;  %2232 = vmatpush.bf16.msk.msrb.mxu1 %vm2231_vm11, %v3995_v59  ;;  %vm2265_vm1 = vmpackc.low %vm318_vm10, %vm314_vm9  ;;  %vm242_vm2 = vcmp.eq.s32.totalorder %v2609_v33, %v2865_v62  ;;  %vm118_vm9 = vcmp.eq.s32.totalorder %v2599_v30, %v2865_v62  ;;  %vm178_vm11 = vcmp.eq.s32.totalorder %v2602_v31, %v2865_v62  ;;  %v2095_v60 = vld [vmem:[%s3859_s1 + $0x48] sm:$0xf]  ;;  %v2416_v63 = vld [vmem:[%s3859_s1 + $0x54] sm:$0xf0] }
  0x37   :  { %vm2217_vm4 = vmpackc.low %vm126_vm13, %vm122_vm12  ;;  %vm182_vm12 = vcmp.eq.s32.totalorder %v2605_v32, %v2865_v62  ;;  %3998 = vst [vmem:[#allocation41_spill] sm:$0xff] %v2995_v3  ;;  %v3007_v31 = vor.u32 %v2410_v55, %v2081_v54  ;;  %v2087_v54 = vld [vmem:[%s3859_s1 + $0x40] sm:$0xf]  ;;  %v2415_v55 = vld [vmem:[%s3859_s1 + $0x4c] sm:$0xf0] }
  0x38   :  { %2264 = vmatpush.bf16.msk.msrb.mxu3 %vm2263_vm5, %v3995_v59  ;;  %vm306_vm5 = vcmp.eq.s32.totalorder %v2615_v35, %v2865_v62  ;;  %vm2233_vm7 = vmpackc.low %vm190_vm0, %vm186_vm15  ;;  %3999 = vst [vmem:[#allocation42_spill] sm:$0xff] %v3004_v12  ;;  %vm234_vm0 = vcmp.eq.s32.totalorder %v2656_v41, %v2865_v62 }
  0x39   :  { %2218 = vmatpush.bf16.msk.msrb.mxu0 %vm2217_vm4, %v3995_v59  ;;  %vm2251_vm10 = vmpackc.low %vm246_vm3, %vm242_vm2  ;;  %4000 = vst [vmem:[#allocation43_spill] sm:$0xff] %v3007_v31  ;;  %vm298_vm2 = vcmp.eq.s32.totalorder %v2662_v43, %v2865_v62  ;;  %vm302_vm3 = vcmp.eq.s32.totalorder %v2665_v44, %v2865_v62 }
  0x3a   :  { %2250 = vmatpush.bf16.msk.msrb.mxu2 %vm2249_vm14, %v3995_v59  ;;  %2234 = vmatpush.bf16.msk.msrb.mxu1 %vm2233_vm7, %v3995_v59  ;;  %vm2267_vm13 = vmpackc.low %vm310_vm6, %vm306_vm5  ;;  %vm106_vm5 = vcmp.eq.s32.totalorder %v2643_v37, %v2865_v62  ;;  %vm110_vm6 = vcmp.eq.s32.totalorder %v2646_v38, %v2865_v62  ;;  %vm170_vm7 = vcmp.eq.s32.totalorder %v2649_v39, %v2865_v62 }
  0x3b   :  { %vm2219_vm14 = vmpackc.low %vm118_vm9, %vm114_vm8  ;;  %vm174_vm8 = vcmp.eq.s32.totalorder %v2652_v40, %v2865_v62  ;;  %v3073_v40 = vor.u32 %v2416_v63, %v2095_v60  ;;  %v4011_v60 = vld [vmem:[#allocation30_spill] sm:$0xff]  ;;  %v4012_v63 = vld [vmem:[#allocation31_spill] sm:$0xff] }
  0x3c   :  { %2266 = vmatpush.bf16.msk.msrb.mxu3 %vm2265_vm1, %v3995_v59  ;;  %vm2235_vm15 = vmpackc.low %vm182_vm12, %vm178_vm11  ;;  %vm238_vm1 = vcmp.eq.s32.totalorder %v2659_v42, %v2865_v62  ;;  %vm230_vm11 = vcmp.eq.s32.totalorder %v2706_v50, %v2865_v62  ;;  %v2097_v50 = vld [vmem:[%s3859_s1 + $0x58] sm:$0xf0] }
  0x3d   :  { %2220 = vmatpush.bf16.msk.msrb.mxu0 %vm2219_vm14, %v3995_v59  ;;  %vm2253_vm4 = vmpackc.low %vm238_vm1, %vm234_vm0  ;;  %vm294_vm14 = vcmp.eq.s32.totalorder %v2712_v52, %v2865_v62  ;;  %v3063_v52 = vor.u32 %v2415_v55, %v2087_v54  ;;  %4003 = vst [vmem:[#allocation46_spill] sm:$0xff] %v3073_v40  ;;  %v4005_v54 = vld [vmem:[#allocation16_spill] sm:$0xff]  ;;  %v4006_v55 = vld [vmem:[#allocation17_spill] sm:$0xff] }
  0x3e   :  { %2252 = vmatpush.bf16.msk.msrb.mxu2 %vm2251_vm10, %v3995_v59  ;;  %2236 = vmatpush.bf16.msk.msrb.mxu1 %vm2235_vm15, %v3995_v59  ;;  %vm2269_vm9 = vmpackc.low %vm302_vm3, %vm298_vm2  ;;  %vm226_vm10 = vcmp.eq.s32.totalorder %v2703_v49, %v2865_v62  ;;  %v3071_v49 = vor.u32 %v2413_v46, %v2089_v53  ;;  %vm98_vm2 = vcmp.eq.s32.totalorder %v4005_v54, %v2865_v62  ;;  %v4007_v46 = vld [vmem:[#allocation18_spill] sm:$0xff]  ;;  %v4010_v53 = vld [vmem:[#allocation29_spill] sm:$0xff] }
  0x3f   :  { %1134 = vmatmul.bf16.gmra.mxu0 %v2976_v0  ;;  %vm2221_vm12 = vmpackc.low %vm110_vm6, %vm106_vm5  ;;  %4001 = vst [vmem:[#allocation44_spill] sm:$0xff] %v3063_v52  ;;  %vm102_vm3 = vcmp.eq.s32.totalorder %v4006_v55, %v2865_v62  ;;  %v2418_v54 = vld [vmem:[%s3859_s1 + $0x6c] sm:$0xf] }
  0x40   :  { %2268 = vmatpush.bf16.msk.msrb.mxu3 %vm2267_vm13, %v3995_v59  ;;  %1173 = vmatmul.bf16.gmra.mxu1 %v2995_v3  ;;  %vm290_vm13 = vcmp.eq.s32.totalorder %v2709_v51, %v2865_v62  ;;  %vm2237_vm15 = vmpackc.low %vm174_vm8, %vm170_vm7  ;;  %v2414_v51 = vld [vmem:[%s3859_s1 + $0x4c] sm:$0xf]  ;;  %4002 = vst [vmem:[#allocation45_spill] sm:$0xff] %v3071_v49  ;;  %vm222_vm8 = vcmp.eq.s32.totalorder %v4010_v53, %v2865_v62  ;;  %v4015_v53 = vld [vmem:[#allocation26_spill] sm:$0xff] }
  0x41   :  { %1212 = vmatmul.bf16.gmra.mxu2 %v3004_v12  ;;  %2222 = vmatpush.bf16.msk.msrb.mxu0 %vm2221_vm12, %v3995_v59  ;;  %vm2255_vm0 = vmpackc.low %vm230_vm11, %vm226_vm10  ;;  %v3075_v39 = vor.u32 %v2414_v51, %v2097_v50  ;;  %v4008_v50 = vld [vmem:[#allocation19_spill] sm:$0xff]  ;;  %v4009_v51 = vld [vmem:[#allocation28_spill] sm:$0xff]  ;;  %vm286_vm10 = vcmp.eq.s32.totalorder %v4012_v63, %v2865_v62 }
  0x42   :  { %2254 = vmatpush.bf16.msk.msrb.mxu2 %vm2253_vm4, %v3995_v59  ;;  %2238 = vmatpush.bf16.msk.msrb.mxu1 %vm2237_vm15, %v3995_v59  ;;  %vm2271_vm1 = vmpackc.low %vm294_vm14, %vm290_vm13  ;;  %vm162_vm4 = vcmp.eq.s32.totalorder %v4007_v46, %v2865_v62  ;;  %vm166_vm5 = vcmp.eq.s32.totalorder %v4008_v50, %v2865_v62  ;;  %vm218_vm7 = vcmp.eq.s32.totalorder %v4009_v51, %v2865_v62  ;;  %v4013_v46 = vld [vmem:[#allocation24_spill] sm:$0xff]  ;;  %v4014_v50 = vld [vmem:[#allocation25_spill] sm:$0xff] }
  0x43   :  { %1251 = vmatmul.bf16.gmra.mxu3 %v3007_v31  ;;  %4004 = vst [vmem:[#allocation47_spill] sm:$0xff] %v3075_v39  ;;  %vm2223_vm6 = vmpackc.low %vm102_vm3, %vm98_vm2  ;;  %vm90_vm12 = vcmp.eq.s32.totalorder %v4013_v46, %v2865_v62  ;;  %vm94_vm13 = vcmp.eq.s32.totalorder %v4014_v50, %v2865_v62  ;;  %vm154_vm15 = vcmp.eq.s32.totalorder %v4015_v53, %v2865_v62  ;;  %v2103_v46 = vld [vmem:[%s3859_s1 + $0x60] sm:$0xf]  ;;  %v2419_v50 = vld [vmem:[%s3859_s1 + $0x6c] sm:$0xf0] }
  0x44   :  { %2270 = vmatpush.bf16.msk.msrb.mxu3 %vm2269_vm9, %v3995_v59  ;;  %vm282_vm9 = vcmp.eq.s32.totalorder %v4011_v60, %v2865_v62  ;;  %vm2239_vm11 = vmpackc.low %vm166_vm5, %vm162_vm4  ;;  %v4016_v60 = vld [vmem:[#allocation27_spill] sm:$0xff]  ;;  %v2105_v53 = vld [vmem:[%s3859_s1 + $0x70] sm:$0xf0]  ;;  %v3129_v55 = vor.u32 %v2419_v50, %v2103_v46  ;;  %vm210_vm4 = vcmp.eq.s32.totalorder %v2814_v58, %v2865_v62  ;;  %vm214_vm5 = vcmp.eq.s32.totalorder %v2817_v57, %v2865_v62 }
  0x45   :  { %2224 = vmatpush.bf16.msk.msrb.mxu0 %vm2223_vm6, %v3995_v59  ;;  %vm2257_vm14 = vmpackc.low %vm222_vm8, %vm218_vm7  ;;  %v2111_v63 = vld [vmem:[%s3859_s1 + $0x68] sm:$0xf]  ;;  %v2420_v51 = vld [vmem:[%s3859_s1 + $0x74] sm:$0xf0]  ;;  %vm274_vm6 = vcmp.eq.s32.totalorder %v2820_v48, %v2865_v62  ;;  %vm278_vm7 = vcmp.eq.s32.totalorder %v2823_v47, %v2865_v62 }
  0x46   :  { %2256 = vmatpush.bf16.msk.msrb.mxu2 %vm2255_vm0, %v3995_v59  ;;  %2240 = vmatpush.bf16.msk.msrb.mxu1 %vm2239_vm11, %v3995_v59  ;;  %vm158_vm0 = vcmp.eq.s32.totalorder %v4016_v60, %v2865_v62  ;;  %vm2225_vm2 = vmpackc.low %vm94_vm13, %vm90_vm12  ;;  %v2417_v60 = vld [vmem:[%s3859_s1 + $0x64] sm:$0xf]  ;;  %4017 = vst [vmem:[#allocation48_spill] sm:$0xff] %v3129_v55  ;;  %v2119_v46 = vld [vmem:[%s3859_s1 + $0x80] sm:$0xf] }
  0x47   :  { %vm2241_vm3 = vmpackc.low %vm158_vm0, %vm154_vm15  ;;  %v2423_v50 = vld [vmem:[%s3859_s1 + $0x8c] sm:$0xf0] }
  0x48   :  { %2272 = vmatpush.bf16.msk.msrb.mxu3 %vm2271_vm1, %v3995_v59  ;;  %vm2273_vm1 = vmpackc.low %vm286_vm10, %vm282_vm9  ;;  %vm82_vm9 = vcmp.eq.s32.totalorder %v2452_v2, %v2865_v62  ;;  %vm86_vm10 = vcmp.eq.s32.totalorder %v2799_v56, %v2865_v62 }
  0x49   :  { %2226 = vmatpush.bf16.msk.msrb.mxu0 %vm2225_vm2, %v3995_v59  ;;  %vm2259_vm8 = vmpackc.low %vm214_vm5, %vm210_vm4 }
  0x4a   :  { %2258 = vmatpush.bf16.msk.msrb.mxu2 %vm2257_vm14, %v3995_v59  ;;  %2242 = vmatpush.bf16.msk.msrb.mxu1 %vm2241_vm3, %v3995_v59  ;;  %vm2275_vm13 = vmpackc.low %vm278_vm7, %vm274_vm6 }
  0x4b   :  { %vm2227_vm14 = vmpackc.low %vm86_vm10, %vm82_vm9 }
  0x4c   :  { %2274 = vmatpush.bf16.msk.msrb.mxu3 %vm2273_vm1, %v3995_v59 }
  0x4d   :  { %2228 = vmatpush.bf16.msk.msrb.mxu0 %vm2227_vm14, %v3995_v59 }
  0x4e   :  { %2260 = vmatpush.bf16.msk.msrb.mxu2 %vm2259_vm8, %v3995_v59 }
  0x4f   :  { %1139 = vmatmul.bf16.gmra.mxu0 %v3063_v52 }
  0x50   :  { %1178 = vmatmul.bf16.gmra.mxu1 %v3071_v49  ;;  %v3139_v49 = vor.u32 %v2420_v51, %v2111_v63  ;;  %2276 = vmatpush.bf16.msk.msrb.mxu3 %vm2275_vm13, %v3995_v59  ;;  %v2121_v51 = vld [vmem:[%s3859_s1 + $0x90] sm:$0xf0]  ;;  %v3185_v63 = vor.u32 %v2423_v50, %v2119_v46  ;;  %v3204_v46 = vperm.slane %v2450_v1, 2  ;;  %v2135_v1 = vld [vmem:[%s3859_s1 + $0xa0] sm:$0xf] }
  0x51   :  { %1217 = vmatmul.bf16.gmra.mxu2 %v3073_v40  ;;  %v3137_v40 = vor.u32 %v2417_v60, %v2105_v53  ;;  %v2127_v53 = vld [vmem:[%s3859_s1 + $0x88] sm:$0xf]  ;;  %v2424_v60 = vld [vmem:[%s3859_s1 + $0x94] sm:$0xf0]  ;;  %v2137_v50 = vld [vmem:[%s3859_s1 + $0xb0] sm:$0xf0] }
  0x52   :  { %4019 = vst [vmem:[#allocation50_spill] sm:$0xff] %v3139_v49  ;;  %v3195_v2 = vor.u32 %v2424_v60, %v2127_v53  ;;  %vm267_vm0 = vcmp.eq.s32.totalorder %v2470_v8, %v3204_v46  ;;  %vm271_vm1 = vcmp.eq.s32.totalorder %v2473_v9, %v3204_v46  ;;  %vm331_vm2 = vcmp.eq.s32.totalorder %v2476_v10, %v3204_v46  ;;  %v2426_v60 = vld [vmem:[%s3859_s1 + $0xac] sm:$0xf] }
  0x53   :  { %1256 = vmatmul.bf16.gmra.mxu3 %v3075_v39  ;;  %v2113_v39 = vld [vmem:[%s3859_s1 + $0x78] sm:$0xf0]  ;;  %4018 = vst [vmem:[#allocation49_spill] sm:$0xff] %v3137_v40  ;;  %vm335_vm3 = vcmp.eq.s32.totalorder %v2479_v11, %v3204_v46  ;;  %vm2309_vm4 = vmpackc.low %vm271_vm1, %vm267_vm0  ;;  %vm139_vm5 = vcmp.eq.s32.totalorder %v2458_v4, %v3204_v46  ;;  %vm143_vm6 = vcmp.eq.s32.totalorder %v2461_v5, %v3204_v46 }
  0x54   :  { %v3141_v52 = vor.u32 %v2418_v54, %v2113_v39  ;;  %v4021_v39 = vld [vmem:[#allocation33_spill] sm:$0xff]  ;;  %v4022_v54 = vld [vmem:[#allocation34_spill] sm:$0xff]  ;;  %4023 = vst [vmem:[#allocation52_spill] sm:$0xff] %v3195_v2  ;;  %vm203_vm7 = vcmp.eq.s32.totalorder %v2464_v6, %v3204_v46  ;;  %vm207_vm8 = vcmp.eq.s32.totalorder %v2467_v7, %v3204_v46  ;;  %2310 = vmatpush.bf16.msk.msra.mxu2 %vm2309_vm4, %v3995_v59  ;;  %vm2325_vm9 = vmpackc.low %vm335_vm3, %vm331_vm2 }
  0x55   :  { %vm146_vm11 = vcmp.eq.s32.totalorder %v4021_v39, %v2865_v62  ;;  %vm150_vm12 = vcmp.eq.s32.totalorder %v4022_v54, %v2865_v62  ;;  %v2421_v62 = vld [vmem:[%s3859_s1 + $0x84] sm:$0xf]  ;;  %v2422_v54 = vld [vmem:[%s3859_s1 + $0x8c] sm:$0xf]  ;;  %v2129_v39 = vld [vmem:[%s3859_s1 + $0x98] sm:$0xf0]  ;;  %vm259_vm10 = vcmp.eq.s32.totalorder %v2512_v17, %v3204_v46  ;;  %2326 = vmatpush.bf16.msk.msra.mxu3 %vm2325_vm9, %v3995_v59  ;;  %vm323_vm13 = vcmp.eq.s32.totalorder %v2518_v19, %v3204_v46 }
  0x56   :  { %4020 = vst [vmem:[#allocation51_spill] sm:$0xff] %v3141_v52  ;;  %vm2243_vm15 = vmpackc.low %vm150_vm12, %vm146_vm11  ;;  %v3193_v56 = vor.u32 %v2421_v62, %v2121_v51  ;;  %v3197_v47 = vor.u32 %v2422_v54, %v2129_v39  ;;  %vm263_vm11 = vcmp.eq.s32.totalorder %v2515_v18, %v3204_v46  ;;  %vm327_vm14 = vcmp.eq.s32.totalorder %v2521_v20, %v3204_v46  ;;  %v2427_v39 = vld [vmem:[%s3859_s1 + $0xac] sm:$0xf0]  ;;  %v2425_v54 = vld [vmem:[%s3859_s1 + $0xa4] sm:$0xf] }
  0x57   :  { %2244 = vmatpush.bf16.msk.msrb.mxu1 %vm2243_vm15, %v3995_v59  ;;  %vm2277_vm12 = vmpackc.low %vm143_vm6, %vm139_vm5  ;;  %v2143_v62 = vld [vmem:[%s3859_s1 + $0xa8] sm:$0xf]  ;;  %v2428_v51 = vld [vmem:[%s3859_s1 + $0xb4] sm:$0xf0]  ;;  %v3253_v53 = vor.u32 %v2427_v39, %v2135_v1  ;;  %v3262_v19 = vor.u32 %v2425_v54, %v2137_v50  ;;  %vm131_vm2 = vcmp.eq.s32.totalorder %v2499_v13, %v3204_v46  ;;  %vm135_vm3 = vcmp.eq.s32.totalorder %v2502_v14, %v3204_v46 }
  0x58   :  { %4024 = vst [vmem:[#allocation53_spill] sm:$0xff] %v3197_v47  ;;  %2278 = vmatpush.bf16.msk.msra.mxu0 %vm2277_vm12, %v3995_v59  ;;  %vm2293_vm15 = vmpackc.low %vm207_vm8, %vm203_vm7  ;;  %v2145_v20 = vld [vmem:[%s3859_s1 + $0xb8] sm:$0xf0]  ;;  %v3264_v18 = vor.u32 %v2428_v51, %v2143_v62  ;;  %vm195_vm4 = vcmp.eq.s32.totalorder %v2505_v15, %v3204_v46  ;;  %vm199_vm5 = vcmp.eq.s32.totalorder %v2508_v16, %v3204_v46  ;;  %v4029_v1 = vld [vmem:[#allocation40_spill] sm:$0xff] }
  0x59   :  { %vm2311_vm0 = vmpackc.low %vm263_vm11, %vm259_vm10  ;;  %4025 = vst [vmem:[#allocation54_spill] sm:$0xff] %v3253_v53  ;;  %v3266_v17 = vor.u32 %v2426_v60, %v2145_v20  ;;  %vm251_vm7 = vcmp.eq.s32.totalorder %v2562_v25, %v3204_v46  ;;  %vm255_vm8 = vcmp.eq.s32.totalorder %v2565_v26, %v3204_v46  ;;  %vm315_vm9 = vcmp.eq.s32.totalorder %v2568_v27, %v3204_v46  ;;  %v4028_v20 = vld [vmem:[#allocation39_spill] sm:$0xff]  ;;  %v4031_v54 = vld [vmem:[#allocation10_spill] sm:$0xff] }
  0x5a   :  { %2312 = vmatpush.bf16.msk.msra.mxu2 %vm2311_vm0, %v3995_v59  ;;  %vm2327_vm1 = vmpackc.low %vm327_vm14, %vm323_vm13  ;;  %4026 = vst [vmem:[#allocation55_spill] sm:$0xff] %v3264_v18  ;;  %vm319_vm10 = vcmp.eq.s32.totalorder %v2571_v28, %v3204_v46  ;;  %vm123_vm12 = vcmp.eq.s32.totalorder %v2549_v21, %v3204_v46  ;;  %vm127_vm13 = vcmp.eq.s32.totalorder %v2552_v22, %v3204_v46  ;;  %v4030_v39 = vld [vmem:[#allocation7_spill] sm:$0xff]  ;;  %v4033_v60 = vld [vmem:[#allocation44_spill] sm:$0xff] }
  0x5b   :  { %2294 = vmatpush.bf16.msk.msra.mxu1 %vm2293_vm15, %v3995_v59  ;;  %2328 = vmatpush.bf16.msk.msra.mxu3 %vm2327_vm1, %v3995_v59  ;;  %4027 = vst [vmem:[#allocation56_spill] sm:$0xff] %v3266_v17  ;;  %vm2279_vm6 = vmpackc.low %vm135_vm3, %vm131_vm2  ;;  %vm187_vm15 = vcmp.eq.s32.totalorder %v2555_v23, %v3204_v46  ;;  %vm191_vm0 = vcmp.eq.s32.totalorder %v2558_v24, %v3204_v46  ;;  %v4032_v50 = vld [vmem:[#allocation11_spill] sm:$0xff] }
  0x5c   :  { %2280 = vmatpush.bf16.msk.msra.mxu0 %vm2279_vm6, %v3995_v59  ;;  %vm2295_vm11 = vmpackc.low %vm199_vm5, %vm195_vm4  ;;  %vm243_vm4 = vcmp.eq.s32.totalorder %v2609_v33, %v3204_v46  ;;  %vm247_vm5 = vcmp.eq.s32.totalorder %v2612_v34, %v3204_v46  ;;  %vm307_vm6 = vcmp.eq.s32.totalorder %v2615_v35, %v3204_v46 }
  0x5d   :  { %vm2313_vm14 = vmpackc.low %vm255_vm8, %vm251_vm7  ;;  %vm311_vm7 = vcmp.eq.s32.totalorder %v2618_v36, %v3204_v46 }
  0x5e   :  { %2314 = vmatpush.bf16.msk.msra.mxu2 %vm2313_vm14, %v3995_v59  ;;  %vm2329_vm1 = vmpackc.low %vm319_vm10, %vm315_vm9  ;;  %vm115_vm9 = vcmp.eq.s32.totalorder %v2596_v29, %v3204_v46  ;;  %vm119_vm10 = vcmp.eq.s32.totalorder %v2599_v30, %v3204_v46 }
  0x5f   :  { %1144 = vmatmul.bf16.gmra.mxu0 %v3129_v55  ;;  %2296 = vmatpush.bf16.msk.msra.mxu1 %vm2295_vm11, %v3995_v59  ;;  %vm2281_vm2 = vmpackc.low %vm127_vm13, %vm123_vm12  ;;  %vm179_vm11 = vcmp.eq.s32.totalorder %v4030_v39, %v3204_v46  ;;  %vm183_vm12 = vcmp.eq.s32.totalorder %v2605_v32, %v3204_v46 }
  0x60   :  { %1183 = vmatmul.bf16.gmra.mxu1 %v3137_v40  ;;  %2330 = vmatpush.bf16.msk.msra.mxu3 %vm2329_vm1, %v3995_v59  ;;  %vm2297_vm3 = vmpackc.low %vm191_vm0, %vm187_vm15  ;;  %vm235_vm0 = vcmp.eq.s32.totalorder %v2656_v41, %v3204_v46  ;;  %vm239_vm1 = vcmp.eq.s32.totalorder %v2659_v42, %v3204_v46  ;;  %v4040_v42 = vld [vmem:[#allocation47_spill] sm:$0xff] }
  0x61   :  { %1222 = vmatmul.bf16.gmra.mxu2 %v3139_v49  ;;  %2282 = vmatpush.bf16.msk.msra.mxu0 %vm2281_vm2, %v3995_v59  ;;  %vm2315_vm8 = vmpackc.low %vm247_vm5, %vm243_vm4  ;;  %vm299_vm2 = vcmp.eq.s32.totalorder %v2662_v43, %v3204_v46  ;;  %v4039_v43 = vld [vmem:[#allocation46_spill] sm:$0xff] }
  0x62   :  { %2316 = vmatpush.bf16.msk.msra.mxu2 %vm2315_vm8, %v3995_v59  ;;  %vm2331_vm13 = vmpackc.low %vm311_vm7, %vm307_vm6  ;;  %vm107_vm6 = vcmp.eq.s32.totalorder %v2643_v37, %v3204_v46  ;;  %vm111_vm7 = vcmp.eq.s32.totalorder %v2646_v38, %v3204_v46  ;;  %vm171_vm8 = vcmp.eq.s32.totalorder %v4031_v54, %v3204_v46  ;;  %v4034_v38 = vld [vmem:[#allocation20_spill] sm:$0xff]  ;;  %v4035_v54 = vld [vmem:[#allocation21_spill] sm:$0xff] }
  0x63   :  { %1261 = vmatmul.bf16.gmra.mxu3 %v3141_v52  ;;  %2298 = vmatpush.bf16.msk.msra.mxu1 %vm2297_vm3, %v3995_v59  ;;  %vm2283_vm14 = vmpackc.low %vm119_vm10, %vm115_vm9  ;;  %vm303_vm3 = vcmp.eq.s32.totalorder %v2665_v44, %v3204_v46  ;;  %vm175_vm9 = vcmp.eq.s32.totalorder %v4032_v50, %v3204_v46  ;;  %v4036_v50 = vld [vmem:[#allocation22_spill] sm:$0xff]  ;;  %v4037_v37 = vld [vmem:[#allocation23_spill] sm:$0xff] }
  0x64   :  { %2332 = vmatpush.bf16.msk.msra.mxu3 %vm2331_vm13, %v3995_v59  ;;  %vm2299_vm15 = vmpackc.low %vm183_vm12, %vm179_vm11  ;;  %vm227_vm12 = vcmp.eq.s32.totalorder %v4034_v38, %v3204_v46  ;;  %vm231_vm13 = vcmp.eq.s32.totalorder %v4035_v54, %v3204_v46  ;;  %v4038_v44 = vld [vmem:[#allocation45_spill] sm:$0xff]  ;;  %v4041_v38 = vld [vmem:[#allocation16_spill] sm:$0xff] }
  0x65   :  { %2284 = vmatpush.bf16.msk.msra.mxu0 %vm2283_vm14, %v3995_v59  ;;  %vm2317_vm4 = vmpackc.low %vm239_vm1, %vm235_vm0  ;;  %vm291_vm14 = vcmp.eq.s32.totalorder %v4036_v50, %v3204_v46  ;;  %v4042_v54 = vld [vmem:[#allocation17_spill] sm:$0xff]  ;;  %v4043_v50 = vld [vmem:[#allocation18_spill] sm:$0xff] }
  0x66   :  { %2318 = vmatpush.bf16.msk.msra.mxu2 %vm2317_vm4, %v3995_v59  ;;  %vm2333_vm5 = vmpackc.low %vm303_vm3, %vm299_vm2  ;;  %vm99_vm2 = vcmp.eq.s32.totalorder %v4041_v38, %v3204_v46  ;;  %vm103_vm3 = vcmp.eq.s32.totalorder %v4042_v54, %v3204_v46  ;;  %vm163_vm4 = vcmp.eq.s32.totalorder %v4043_v50, %v3204_v46  ;;  %v4045_v50 = vld [vmem:[#allocation28_spill] sm:$0xff]  ;;  %v4046_v54 = vld [vmem:[#allocation29_spill] sm:$0xff] }
  0x67   :  { %2300 = vmatpush.bf16.msk.msra.mxu1 %vm2299_vm15, %v3995_v59  ;;  %vm2285_vm10 = vmpackc.low %vm111_vm7, %vm107_vm6  ;;  %vm295_vm15 = vcmp.eq.s32.totalorder %v4037_v37, %v3204_v46  ;;  %v4044_v37 = vld [vmem:[#allocation19_spill] sm:$0xff] }
  0x68   :  { %2334 = vmatpush.bf16.msk.msra.mxu3 %vm2333_vm5, %v3995_v59  ;;  %vm2301_vm11 = vmpackc.low %vm175_vm9, %vm171_vm8  ;;  %vm167_vm6 = vcmp.eq.s32.totalorder %v4044_v37, %v3204_v46  ;;  %vm219_vm8 = vcmp.eq.s32.totalorder %v4045_v50, %v3204_v46  ;;  %vm223_vm9 = vcmp.eq.s32.totalorder %v4046_v54, %v3204_v46  ;;  %v4047_v37 = vld [vmem:[#allocation30_spill] sm:$0xff] }
  0x69   :  { %2286 = vmatpush.bf16.msk.msra.mxu0 %vm2285_vm10, %v3995_v59  ;;  %vm2319_vm0 = vmpackc.low %vm231_vm13, %vm227_vm12  ;;  %vm283_vm10 = vcmp.eq.s32.totalorder %v4047_v37, %v3204_v46  ;;  %v4050_v37 = vld [vmem:[#allocation25_spill] sm:$0xff]  ;;  %v4051_v54 = vld [vmem:[#allocation26_spill] sm:$0xff] }
  0x6a   :  { %vm2335_vm1 = vmpackc.low %vm295_vm15, %vm291_vm14  ;;  %2320 = vmatpush.bf16.msk.msra.mxu2 %vm2319_vm0, %v3995_v59  ;;  %vm95_vm15 = vcmp.eq.s32.totalorder %v4050_v37, %v3204_v46  ;;  %vm155_vm0 = vcmp.eq.s32.totalorder %v4051_v54, %v3204_v46  ;;  %v4055_v54 = vld [vmem:[#allocation32_spill] sm:$0xff] }
  0x6b   :  { %2302 = vmatpush.bf16.msk.msra.mxu1 %vm2301_vm11, %v3995_v59  ;;  %vm2287_vm5 = vmpackc.low %vm103_vm3, %vm99_vm2 }
  0x6c   :  { %2336 = vmatpush.bf16.msk.msra.mxu3 %vm2335_vm1, %v3995_v59  ;;  %vm2303_vm7 = vmpackc.low %vm167_vm6, %vm163_vm4  ;;  %vm211_vm4 = vcmp.eq.s32.totalorder %v2814_v58, %v3204_v46  ;;  %vm275_vm6 = vcmp.eq.s32.totalorder %v2820_v48, %v3204_v46  ;;  %v4057_v58 = vld [vmem:[#allocation34_spill] sm:$0xff] }
  0x6d   :  { %2288 = vmatpush.bf16.msk.msra.mxu0 %vm2287_vm5, %v3995_v59  ;;  %vm2321_vm12 = vmpackc.low %vm223_vm9, %vm219_vm8  ;;  %vm215_vm5 = vcmp.eq.s32.totalorder %v2817_v57, %v3204_v46 }
  0x6e   :  { %2322 = vmatpush.bf16.msk.msra.mxu2 %vm2321_vm12, %v3995_v59  ;;  %vm2323_vm8 = vmpackc.low %vm215_vm5, %vm211_vm4  ;;  %vm151_vm12 = vcmp.eq.s32.totalorder %v4057_v58, %v3204_v46 }
  0x6f   :  { %1149 = vmatmul.bf16.gmra.mxu0 %v3185_v63  ;;  %2304 = vmatpush.bf16.msk.msra.mxu1 %vm2303_vm7, %v3995_v59 }
  0x70   :  { %1188 = vmatmul.bf16.gmra.mxu1 %v3193_v56 }
  0x71   :  { %1227 = vmatmul.bf16.gmra.mxu2 %v3195_v2 }
  0x72   :  { %2324 = vmatpush.bf16.msk.msra.mxu2 %vm2323_vm8, %v3995_v59 }
  0x73   :  { %1266 = vmatmul.bf16.gmra.mxu3 %v3197_v47 }
  0x7f   :  { %1154 = vmatmul.bf16.gmra.mxu0 %v3253_v53 }
  0x80   :  { %1193 = vmatmul.bf16.gmra.mxu1 %v3262_v19 }
  0x81   :  { %1232 = vmatmul.bf16.gmra.mxu2 %v3264_v18 }
  0x83   :  { %1271 = vmatmul.bf16.gmra.mxu3 %v3266_v17 }
  0x8f   :  { %1285 = vmatmul.bf16.vlgmr.msrb.gmra.mxu0 %v2841_v45 }
  0x90   :  { %1324 = vmatmul.bf16.vlgmr.msrb.gmra.mxu1 %v2862_v61 }
  0x91   :  { %1363 = vmatmul.bf16.vlgmr.msrb.gmra.mxu2 %v4028_v20 }
  0x93   :  { %1402 = vmatmul.bf16.vlgmr.msrb.gmra.mxu3 %v4029_v1 }
  0x9f   :  { %1290 = vmatmul.bf16.gmra.mxu0 %v2976_v0 }
  0xa0   :  { %1329 = vmatmul.bf16.gmra.mxu1 %v2995_v3  ;;  %v4052_v3 = vld [vmem:[#allocation27_spill] sm:$0xff] }
  0xa1   :  { %1368 = vmatmul.bf16.gmra.mxu2 %v3004_v12  ;;  %vm159_vm1 = vcmp.eq.s32.totalorder %v4052_v3, %v3204_v46  ;;  %v4054_v3 = vld [vmem:[#allocation2_spill] sm:$0xff] }
  0xa2   :  { %vm2305_vm3 = vmpackc.low %vm159_vm1, %vm155_vm0  ;;  %vm83_vm9 = vcmp.eq.s32.totalorder %v4054_v3, %v3204_v46 }
  0xa3   :  { %1407 = vmatmul.bf16.gmra.mxu3 %v3007_v31  ;;  %2306 = vmatpush.bf16.msk.msra.mxu1 %vm2305_vm3, %v3995_v59 }
  0xac   :  { %v3350_v62 = vpop.f32.mrf.mxu0 }
  0xad   :  { %v3352_v51 = vpop.f32.mrf.mxu1 }
  0xaf   :  { %1295 = vmatmul.bf16.gmra.mxu0 %v4033_v60  ;;  %v4048_v60 = vld [vmem:[#allocation31_spill] sm:$0xff] }
  0xb0   :  { %1334 = vmatmul.bf16.gmra.mxu1 %v4038_v44  ;;  %vm287_vm11 = vcmp.eq.s32.totalorder %v4048_v60, %v3204_v46  ;;  %v4049_v60 = vld [vmem:[#allocation24_spill] sm:$0xff] }
  0xb1   :  { %1373 = vmatmul.bf16.gmra.mxu2 %v4039_v43  ;;  %vm2337_vm13 = vmpackc.low %vm287_vm11, %vm283_vm10  ;;  %vm91_vm14 = vcmp.eq.s32.totalorder %v4049_v60, %v3204_v46  ;;  %vm87_vm10 = vcmp.eq.s32.totalorder %v4055_v54, %v3204_v46 }
  0xb2   :  { %2338 = vmatpush.bf16.msk.msra.mxu3 %vm2337_vm13, %v3995_v59  ;;  %vm2289_vm2 = vmpackc.low %vm95_vm15, %vm91_vm14 }
  0xb3   :  { %1412 = vmatmul.bf16.gmra.mxu3 %v4040_v42  ;;  %2290 = vmatpush.bf16.msk.msra.mxu0 %vm2289_vm2, %v3995_v59  ;;  %vm2291_vm14 = vmpackc.low %vm87_vm10, %vm83_vm9 }
  0xb4   :  { %v3376_v43 = vpop.f32.mrf.mxu2  ;;  %v3378_v42 = vpop.f32.mrf.mxu0 }
  0xb5   :  { %v3383_v44 = vpop.f32.mrf.mxu1 }
  0xb6   :  { %v3381_v38 = vpop.f32.mrf.mxu3 }
  0xb7   :  { %2292 = vmatpush.bf16.msk.msra.mxu0 %vm2291_vm14, %v3995_v59 }
  0xbc   :  { %v3395_v41 = vpop.f32.mrf.mxu2  ;;  %v3397_v31 = vpop.f32.mrf.mxu0 }
  0xbd   :  { %v3402_v12 = vpop.f32.mrf.mxu1 }
  0xbe   :  { %v3400_v50 = vpop.f32.mrf.mxu3 }
  0xbf   :  { %1300 = vmatmul.bf16.gmra.mxu0 %v3129_v55  ;;  %v4056_v55 = vld [vmem:[#allocation33_spill] sm:$0xff] }
  0xc0   :  { %1339 = vmatmul.bf16.gmra.mxu1 %v3137_v40  ;;  %vm147_vm11 = vcmp.eq.s32.totalorder %v4056_v55, %v3204_v46 }
  0xc1   :  { %1378 = vmatmul.bf16.gmra.mxu2 %v3139_v49  ;;  %vm2307_vm15 = vmpackc.low %vm151_vm12, %vm147_vm11 }
  0xc2   :  { %2308 = vmatpush.bf16.msk.msra.mxu1 %vm2307_vm15, %v3995_v59 }
  0xc3   :  { %1417 = vmatmul.bf16.gmra.mxu3 %v3141_v52  ;;  %v4053_v52 = vld [vmem:[#allocation38_spill] sm:$0xff] }
  0xc4   :  { %v3417_v40 = vpop.f32.mrf.mxu2  ;;  %v3419_v49 = vpop.f32.mrf.mxu0  ;;  %vm279_vm7 = vcmp.eq.s32.totalorder %v4053_v52, %v3204_v46  ;;  %v2430_v46 = vld [vmem:[%s3858_s0] sm:$0xf] }
  0xc5   :  { %v3424_v37 = vpop.f32.mrf.mxu1  ;;  %vm2339_vm13 = vmpackc.low %vm279_vm7, %vm275_vm6  ;;  %v3457_v58 = vperm.slane %v2430_v46, 3 }
  0xc6   :  { %v3422_v60 = vpop.f32.mrf.mxu3  ;;  %2340 = vmatpush.bf16.msk.msra.mxu3 %vm2339_vm13, %v3995_v59 }
  0xc7   :  { %vm268_vm0 = vcmp.eq.s32.totalorder %v2470_v8, %v3457_v58  ;;  %vm272_vm1 = vcmp.eq.s32.totalorder %v2473_v9, %v3457_v58  ;;  %vm332_vm2 = vcmp.eq.s32.totalorder %v2476_v10, %v3457_v58  ;;  %vm336_vm3 = vcmp.eq.s32.totalorder %v2479_v11, %v3457_v58 }
  0xc8   :  { %vm2373_vm4 = vmpackc.low %vm272_vm1, %vm268_vm0  ;;  %vm140_vm6 = vcmp.eq.s32.totalorder %v2458_v4, %v3457_v58  ;;  %vm144_vm7 = vcmp.eq.s32.totalorder %v2461_v5, %v3457_v58  ;;  %vm204_vm8 = vcmp.eq.s32.totalorder %v2464_v6, %v3457_v58  ;;  %vm208_vm9 = vcmp.eq.s32.totalorder %v2467_v7, %v3457_v58  ;;  %v4058_v4 = vld [vmem:[#allocation3_spill] sm:$0xff]  ;;  %v4059_v5 = vld [vmem:[#allocation4_spill] sm:$0xff] }
  0xc9   :  { %2374 = vmatpush.bf16.msk.msrb.mxu2 %vm2373_vm4, %v3995_v59  ;;  %vm2389_vm5 = vmpackc.low %vm336_vm3, %vm332_vm2  ;;  %vm260_vm12 = vcmp.eq.s32.totalorder %v4058_v4, %v3457_v58  ;;  %vm264_vm13 = vcmp.eq.s32.totalorder %v4059_v5, %v3457_v58  ;;  %v4060_v6 = vld [vmem:[#allocation5_spill] sm:$0xff]  ;;  %v4061_v7 = vld [vmem:[#allocation6_spill] sm:$0xff]  ;;  %vm132_vm1 = vcmp.eq.s32.totalorder %v2499_v13, %v3457_v58  ;;  %vm136_vm2 = vcmp.eq.s32.totalorder %v2502_v14, %v3457_v58 }
  0xca   :  { %2390 = vmatpush.bf16.msk.msrb.mxu3 %vm2389_vm5, %v3995_v59  ;;  %vm2341_vm10 = vmpackc.low %vm144_vm7, %vm140_vm6  ;;  %vm324_vm14 = vcmp.eq.s32.totalorder %v4060_v6, %v3457_v58  ;;  %vm328_vm15 = vcmp.eq.s32.totalorder %v4061_v7, %v3457_v58  ;;  %vm196_vm3 = vcmp.eq.s32.totalorder %v2505_v15, %v3457_v58  ;;  %vm200_vm4 = vcmp.eq.s32.totalorder %v2508_v16, %v3457_v58 }
  0xcb   :  { %2342 = vmatpush.bf16.msk.msrb.mxu0 %vm2341_vm10, %v3995_v59  ;;  %vm2357_vm11 = vmpackc.low %vm208_vm9, %vm204_vm8  ;;  %vm252_vm8 = vcmp.eq.s32.totalorder %v2562_v25, %v3457_v58  ;;  %vm256_vm9 = vcmp.eq.s32.totalorder %v2565_v26, %v3457_v58  ;;  %vm316_vm10 = vcmp.eq.s32.totalorder %v2568_v27, %v3457_v58  ;;  %v1170_v14 = vadd.f32 %v3352_v51, %v3350_v62 }
  0xcc   :  { %v3443_v48 = vpop.f32.mrf.mxu2  ;;  %v1140_v57 = vpop.f32.mrf.mxu0  ;;  %2358 = vmatpush.bf16.msk.msrb.mxu1 %vm2357_vm11, %v3995_v59  ;;  %vm2375_vm0 = vmpackc.low %vm264_vm13, %vm260_vm12  ;;  %vm320_vm11 = vcmp.eq.s32.totalorder %v2571_v28, %v3457_v58 }
  0xcd   :  { %v1179_v3 = vpop.f32.mrf.mxu1  ;;  %2376 = vmatpush.bf16.msk.msrb.mxu2 %vm2375_vm0, %v3995_v59  ;;  %vm2391_vm5 = vmpackc.low %vm328_vm15, %vm324_vm14  ;;  %v1209_v26 = vadd.f32 %v3376_v43, %v1170_v14  ;;  %vm124_vm14 = vcmp.eq.s32.totalorder %v2549_v21, %v3457_v58  ;;  %vm128_vm15 = vcmp.eq.s32.totalorder %v2552_v22, %v3457_v58  ;;  %vm188_vm0 = vcmp.eq.s32.totalorder %v2555_v23, %v3457_v58  ;;  %v4066_v14 = vld [vmem:[#allocation13_spill] sm:$0xff] }
  0xce   :  { %v3446_v52 = vpop.f32.mrf.mxu3  ;;  %2392 = vmatpush.bf16.msk.msrb.mxu3 %vm2391_vm5, %v3995_v59  ;;  %vm2343_vm6 = vmpackc.low %vm136_vm2, %vm132_vm1  ;;  %v1180_v13 = vadd.f32 %v1179_v3, %v1140_v57  ;;  %vm192_vm1 = vcmp.eq.s32.totalorder %v2558_v24, %v3457_v58  ;;  %v1172_v22 = vadd.f32 %v3383_v44, %v3378_v42  ;;  %vm248_vm5 = vcmp.eq.s32.totalorder %v2612_v34, %v3457_v58 }
  0xcf   :  { %1305 = vmatmul.bf16.gmra.mxu0 %v3185_v63  ;;  %vm2359_vm7 = vmpackc.low %vm200_vm4, %vm196_vm3  ;;  %v1248_v43 = vadd.f32 %v3381_v38, %v1209_v26  ;;  %vm244_vm4 = vcmp.eq.s32.totalorder %v2609_v33, %v3457_v58 }
  0xd0   :  { %1344 = vmatmul.bf16.gmra.mxu1 %v3193_v56  ;;  %2344 = vmatpush.bf16.msk.msrb.mxu0 %vm2343_vm6, %v3995_v59  ;;  %vm2377_vm12 = vmpackc.low %vm256_vm9, %vm252_vm8  ;;  %vm308_vm6 = vcmp.eq.s32.totalorder %v2615_v35, %v3457_v58  ;;  %vm312_vm8 = vcmp.eq.s32.totalorder %v2618_v36, %v3457_v58  ;;  %vm116_vm9 = vcmp.eq.s32.totalorder %v2596_v29, %v3457_v58 }
  0xd1   :  { %1383 = vmatmul.bf16.gmra.mxu2 %v3195_v2  ;;  %2360 = vmatpush.bf16.msk.msrb.mxu1 %vm2359_vm7, %v3995_v59  ;;  %vm2393_vm13 = vmpackc.low %vm320_vm11, %vm316_vm10  ;;  %vm120_vm10 = vcmp.eq.s32.totalorder %v2599_v30, %v3457_v58  ;;  %vm180_vm11 = vcmp.eq.s32.totalorder %v4030_v39, %v3457_v58  ;;  %v1175_v35 = vadd.f32 %v3402_v12, %v3397_v31 }
  0xd2   :  { %2378 = vmatpush.bf16.msk.msrb.mxu2 %vm2377_vm12, %v3995_v59  ;;  %2394 = vmatpush.bf16.msk.msrb.mxu3 %vm2393_vm13, %v3995_v59  ;;  %vm2345_vm2 = vmpackc.low %vm128_vm15, %vm124_vm14  ;;  %vm184_vm13 = vcmp.eq.s32.totalorder %v2605_v32, %v3457_v58 }
  0xd3   :  { %1422 = vmatmul.bf16.gmra.mxu3 %v3197_v47  ;;  %vm2361_vm3 = vmpackc.low %vm192_vm1, %vm188_vm0  ;;  %vm240_vm1 = vcmp.eq.s32.totalorder %v4066_v14, %v3457_v58  ;;  %v4087_v14 = vld [vmem:[#allocation30_spill] sm:$0xff] }
  0xd4   :  { %v1218_v55 = vpop.f32.mrf.mxu2  ;;  %v3459_v54 = vpop.f32.mrf.mxu0  ;;  %2346 = vmatpush.bf16.msk.msrb.mxu0 %vm2345_vm2, %v3995_v59  ;;  %vm2379_vm7 = vmpackc.low %vm248_vm5, %vm244_vm4 }
  0xd5   :  { %v3469_v2 = vpop.f32.mrf.mxu1  ;;  %v1219_v25 = vadd.f32 %v1218_v55, %v1180_v13  ;;  %2362 = vmatpush.bf16.msk.msrb.mxu1 %vm2361_vm3, %v3995_v59  ;;  %vm2395_vm12 = vmpackc.low %vm312_vm8, %vm308_vm6  ;;  %v4063_v13 = vld [vmem:[#allocation42_spill] sm:$0xff] }
  0xd6   :  { %v1257_v47 = vpop.f32.mrf.mxu3  ;;  %v1182_v55 = vadd.f32 %v3469_v2, %v3459_v54  ;;  %v1211_v2 = vadd.f32 %v3395_v41, %v1172_v22  ;;  %2380 = vmatpush.bf16.msk.msrb.mxu2 %vm2379_vm7, %v3995_v59  ;;  %2396 = vmatpush.bf16.msk.msrb.mxu3 %vm2395_vm12, %v3995_v59  ;;  %vm2347_vm14 = vmpackc.low %vm120_vm10, %vm116_vm9 }
  0xd7   :  { %v1258_v28 = vadd.f32 %v1257_v47, %v1219_v25  ;;  %vm2363_vm15 = vmpackc.low %vm184_vm13, %vm180_vm11 }
  0xd8   :  { %2348 = vmatpush.bf16.msk.msrb.mxu0 %vm2347_vm14, %v3995_v59  ;;  %v1250_v32 = vadd.f32 %v3400_v50, %v1211_v2  ;;  %v4064_v50 = vld [vmem:[#allocation43_spill] sm:$0xff] }
  0xd9   :  { %v1745_v23 = vadd.f32 %v1258_v28, %v1248_v43  ;;  %2364 = vmatpush.bf16.msk.msrb.mxu1 %vm2363_vm15, %v3995_v59 }
  0xdc   :  { %v3481_v8 = vpop.f32.mrf.mxu2  ;;  %v3483_v9 = vpop.f32.mrf.mxu0 }
  0xdd   :  { %v3487_v11 = vpop.f32.mrf.mxu1  ;;  %v1221_v24 = vadd.f32 %v3481_v8, %v1182_v55  ;;  %v1177_v55 = vadd.f32 %v3424_v37, %v3419_v49 }
  0xde   :  { %v3485_v10 = vpop.f32.mrf.mxu3  ;;  %v1185_v33 = vadd.f32 %v3487_v11, %v3483_v9  ;;  %v4062_v11 = vld [vmem:[#allocation41_spill] sm:$0xff] }
  0xdf   :  { %1310 = vmatmul.bf16.gmra.mxu0 %v3253_v53  ;;  %v1260_v29 = vadd.f32 %v3485_v10, %v1221_v24  ;;  %v1214_v10 = vadd.f32 %v3417_v40, %v1175_v35  ;;  %v4068_v40 = vld [vmem:[#allocation15_spill] sm:$0xff]  ;;  %v4076_v35 = vld [vmem:[#allocation22_spill] sm:$0xff] }
  0xe0   :  { %1349 = vmatmul.bf16.gmra.mxu1 %v3262_v19  ;;  %vm304_vm3 = vcmp.eq.s32.totalorder %v4068_v40, %v3457_v58  ;;  %vm292_vm14 = vcmp.eq.s32.totalorder %v4076_v35, %v3457_v58  ;;  %v4106_v35 = vld [vmem:[#allocation53_spill] sm:$0xff] }
  0xe1   :  { %1388 = vmatmul.bf16.gmra.mxu2 %v3264_v18  ;;  %v1749_v8 = vadd.f32 %v1260_v29, %v1250_v32  ;;  %v4073_v29 = vld [vmem:[#allocation44_spill] sm:$0xff]  ;;  %v4079_v32 = vld [vmem:[#allocation46_spill] sm:$0xff] }
  0xe3   :  { %1427 = vmatmul.bf16.gmra.mxu3 %v3266_v17 }
  0xe4   :  { %v3503_v46 = vpop.f32.mrf.mxu2  ;;  %v3505_v53 = vpop.f32.mrf.mxu0 }
  0xe5   :  { %v3517_v5 = vpop.f32.mrf.mxu1  ;;  %v1224_v42 = vadd.f32 %v3503_v46, %v1185_v33  ;;  %v4065_v46 = vld [vmem:[#allocation12_spill] sm:$0xff] }
  0xe6   :  { %v3515_v4 = vpop.f32.mrf.mxu3  ;;  %vm236_vm0 = vcmp.eq.s32.totalorder %v4065_v46, %v3457_v58  ;;  %v4086_v46 = vld [vmem:[#allocation29_spill] sm:$0xff] }
  0xe7   :  { %v1263_v31 = vadd.f32 %v3515_v4, %v1224_v42  ;;  %vm2381_vm4 = vmpackc.low %vm240_vm1, %vm236_vm0  ;;  %v1253_v4 = vadd.f32 %v3422_v60, %v1214_v10  ;;  %v4080_v42 = vld [vmem:[#allocation47_spill] sm:$0xff] }
  0xe8   :  { %2382 = vmatpush.bf16.msk.msrb.mxu2 %vm2381_vm4, %v3995_v59 }
  0xec   :  { %v3533_v15 = vpop.f32.mrf.mxu2  ;;  %v1150_v16 = vpop.f32.mrf.mxu0 }
  0xed   :  { %v1189_v3 = vpop.f32.mrf.mxu1 }
  0xee   :  { %v3535_v57 = vpop.f32.mrf.mxu3  ;;  %v1190_v27 = vadd.f32 %v1189_v3, %v1150_v16  ;;  %v4067_v16 = vld [vmem:[#allocation14_spill] sm:$0xff]  ;;  %v1187_v3 = vadd.f32 %v3517_v5, %v3505_v53  ;;  %v4070_v53 = vld [vmem:[#allocation9_spill] sm:$0xff] }
  0xef   :  { %1441 = vmatmul.bf16.vlgmr.msra.gmra.mxu0 %v2841_v45  ;;  %vm300_vm2 = vcmp.eq.s32.totalorder %v4067_v16, %v3457_v58  ;;  %vm112_vm7 = vcmp.eq.s32.totalorder %v4070_v53, %v3457_v58  ;;  %v4071_v5 = vld [vmem:[#allocation10_spill] sm:$0xff]  ;;  %v4088_v16 = vld [vmem:[#allocation31_spill] sm:$0xff] }
  0xf0   :  { %1480 = vmatmul.bf16.vlgmr.msra.gmra.mxu1 %v2862_v61  ;;  %vm2397_vm5 = vmpackc.low %vm304_vm3, %vm300_vm2  ;;  %vm172_vm8 = vcmp.eq.s32.totalorder %v4071_v5, %v3457_v58 }
  0xf1   :  { %1519 = vmatmul.bf16.vlgmr.msra.gmra.mxu2 %v4028_v20  ;;  %2398 = vmatpush.bf16.msk.msrb.mxu3 %vm2397_vm5, %v3995_v59 }
  0xf3   :  { %1558 = vmatmul.bf16.vlgmr.msra.gmra.mxu3 %v4029_v1 }
  0xf4   :  { %v1228_v47 = vpop.f32.mrf.mxu2  ;;  %v1152_v62 = vpop.f32.mrf.mxu0 }
  0xf5   :  { %v1229_v51 = vadd.f32 %v1228_v47, %v1190_v27  ;;  %v1191_v21 = vpop.f32.mrf.mxu1  ;;  %v1753_v47 = vadd.f32 %v1263_v31, %v1253_v4 }
  0xf6   :  { %v1267_v6 = vpop.f32.mrf.mxu3  ;;  %v1192_v30 = vadd.f32 %v1191_v21, %v1152_v62  ;;  %v1226_v62 = vadd.f32 %v3533_v15, %v1187_v3  ;;  %v4072_v21 = vld [vmem:[#allocation11_spill] sm:$0xff] }
  0xf7   :  { %v1268_v38 = vadd.f32 %v1267_v6, %v1229_v51  ;;  %v4069_v51 = vld [vmem:[#allocation8_spill] sm:$0xff]  ;;  %v1216_v6 = vadd.f32 %v3443_v48, %v1177_v55  ;;  %vm176_vm10 = vcmp.eq.s32.totalorder %v4072_v21, %v3457_v58  ;;  %v4093_v55 = vld [vmem:[#allocation25_spill] sm:$0xff]  ;;  %v4097_v21 = vld [vmem:[#allocation35_spill] sm:$0xff] }
  0xf8   :  { %vm108_vm6 = vcmp.eq.s32.totalorder %v4069_v51, %v3457_v58  ;;  %vm2365_vm11 = vmpackc.low %vm176_vm10, %vm172_vm8  ;;  %v1265_v49 = vadd.f32 %v3535_v57, %v1226_v62  ;;  %v4074_v57 = vld [vmem:[#allocation20_spill] sm:$0xff]  ;;  %vm284_vm10 = vcmp.eq.s32.totalorder %v4087_v14, %v3457_v58  ;;  %v4095_v62 = vld [vmem:[#allocation27_spill] sm:$0xff] }
  0xf9   :  { %v1761_v34 = vadd.f32 %v1745_v23, %v1268_v38  ;;  %vm2349_vm9 = vmpackc.low %vm112_vm7, %vm108_vm6  ;;  %2366 = vmatpush.bf16.msk.msrb.mxu1 %vm2365_vm11, %v3995_v59  ;;  %v1255_v22 = vadd.f32 %v3446_v52, %v1216_v6  ;;  %vm228_vm12 = vcmp.eq.s32.totalorder %v4074_v57, %v3457_v58  ;;  %v4077_v52 = vld [vmem:[#allocation45_spill] sm:$0xff]  ;;  %vm288_vm11 = vcmp.eq.s32.totalorder %v4088_v16, %v3457_v58  ;;  %v4107_v14 = vld [vmem:[#allocation54_spill] sm:$0xff] }
  0xfa   :  { %2350 = vmatpush.bf16.msk.msrb.mxu0 %vm2349_vm9, %v3995_v59  ;;  %vm224_vm9 = vcmp.eq.s32.totalorder %v4086_v46, %v3457_v58 }
  0xfb   :  { %1777 = vst [vmem:[%s3860_s2] sm:$0xff] %v1761_v34  ;;  %v1757_v33 = vadd.f32 %v1265_v49, %v1255_v22  ;;  %v4099_v49 = vld [vmem:[#allocation37_spill] sm:$0xff]  ;;  %v4101_v22 = vld [vmem:[#allocation2_spill] sm:$0xff] }
  0xfc   :  { %v1230_v36 = vpop.f32.mrf.mxu2  ;;  %v1155_v41 = vpop.f32.mrf.mxu0 }
  0xfd   :  { %v1231_v44 = vadd.f32 %v1230_v36, %v1192_v30  ;;  %v1194_v54 = vpop.f32.mrf.mxu1  ;;  %v4075_v30 = vld [vmem:[#allocation21_spill] sm:$0xff]  ;;  %v4078_v36 = vld [vmem:[#allocation23_spill] sm:$0xff] }
  0xfe   :  { %v1269_v39 = vpop.f32.mrf.mxu3  ;;  %v1195_v7 = vadd.f32 %v1194_v54, %v1155_v41  ;;  %vm232_vm13 = vcmp.eq.s32.totalorder %v4075_v30, %v3457_v58  ;;  %vm296_vm0 = vcmp.eq.s32.totalorder %v4078_v36, %v3457_v58  ;;  %v4083_v54 = vld [vmem:[#allocation18_spill] sm:$0xff] }
  0xff   :  { %v1270_v9 = vadd.f32 %v1269_v39, %v1231_v44  ;;  %1446 = vmatmul.bf16.gmra.mxu0 %v2976_v0  ;;  %vm2383_vm15 = vmpackc.low %vm232_vm13, %vm228_vm12  ;;  %v4081_v44 = vld [vmem:[#allocation16_spill] sm:$0xff]  ;;  %v4082_v39 = vld [vmem:[#allocation17_spill] sm:$0xff]  ;;  %vm164_vm4 = vcmp.eq.s32.totalorder %v4083_v54, %v3457_v58 }
 0x100   :  { %1485 = vmatmul.bf16.gmra.mxu1 %v4062_v11  ;;  %vm2399_vm1 = vmpackc.low %vm296_vm0, %vm292_vm14  ;;  %2384 = vmatpush.bf16.msk.msrb.mxu2 %vm2383_vm15, %v3995_v59  ;;  %vm100_vm2 = vcmp.eq.s32.totalorder %v4081_v44, %v3457_v58  ;;  %vm104_vm3 = vcmp.eq.s32.totalorder %v4082_v39, %v3457_v58  ;;  %vm96_vm15 = vcmp.eq.s32.totalorder %v4093_v55, %v3457_v58 }
 0x101   :  { %v1765_v12 = vadd.f32 %v1749_v8, %v1270_v9  ;;  %1524 = vmatmul.bf16.gmra.mxu2 %v4063_v13  ;;  %2400 = vmatpush.bf16.msk.msrb.mxu3 %vm2399_vm1, %v3995_v59  ;;  %vm2351_vm5 = vmpackc.low %vm104_vm3, %vm100_vm2  ;;  %v4084_v8 = vld [vmem:[#allocation19_spill] sm:$0xff]  ;;  %vm160_vm1 = vcmp.eq.s32.totalorder %v4095_v62, %v3457_v58 }
 0x102   :  { %vm168_vm6 = vcmp.eq.s32.totalorder %v4084_v8, %v3457_v58  ;;  %2352 = vmatpush.bf16.msk.msrb.mxu0 %vm2351_vm5, %v3995_v59  ;;  %vm2401_vm13 = vmpackc.low %vm288_vm11, %vm284_vm10 }
 0x103   :  { %1563 = vmatmul.bf16.gmra.mxu3 %v4064_v50  ;;  %1781 = vst [vmem:[%s3860_s2 + $0x20] sm:$0xff] %v1765_v12  ;;  %vm2367_vm7 = vmpackc.low %vm168_vm6, %vm164_vm4  ;;  %vm212_vm4 = vcmp.eq.s32.totalorder %v4097_v21, %v3457_v58  ;;  %vm276_vm6 = vcmp.eq.s32.totalorder %v4099_v49, %v3457_v58 }
 0x104   :  { %v1233_v25 = vpop.f32.mrf.mxu2  ;;  %v1157_v26 = vpop.f32.mrf.mxu0  ;;  %2368 = vmatpush.bf16.msk.msrb.mxu1 %vm2367_vm7, %v3995_v59 }
 0x105   :  { %v1234_v27 = vadd.f32 %v1233_v25, %v1195_v7  ;;  %v1196_v43 = vpop.f32.mrf.mxu1  ;;  %v4085_v7 = vld [vmem:[#allocation28_spill] sm:$0xff]  ;;  %2402 = vmatpush.bf16.msk.msrb.mxu3 %vm2401_vm13, %v3995_v59 }
 0x106   :  { %v1272_v28 = vpop.f32.mrf.mxu3  ;;  %v1197_v15 = vadd.f32 %v1196_v43, %v1157_v26  ;;  %vm220_vm8 = vcmp.eq.s32.totalorder %v4085_v7, %v3457_v58  ;;  %v4089_v26 = vld [vmem:[#allocation48_spill] sm:$0xff] }
 0x107   :  { %v1273_v60 = vadd.f32 %v1272_v28, %v1234_v27  ;;  %vm2385_vm12 = vmpackc.low %vm224_vm9, %vm220_vm8  ;;  %v4090_v27 = vld [vmem:[#allocation49_spill] sm:$0xff]  ;;  %v4091_v28 = vld [vmem:[#allocation50_spill] sm:$0xff]  ;;  %vm84_vm9 = vcmp.eq.s32.totalorder %v4101_v22, %v3457_v58 }
 0x108   :  { %2386 = vmatpush.bf16.msk.msrb.mxu2 %vm2385_vm12, %v3995_v59  ;;  %v4092_v43 = vld [vmem:[#allocation24_spill] sm:$0xff] }
 0x109   :  { %v1769_v37 = vadd.f32 %v1753_v47, %v1273_v60  ;;  %vm92_vm14 = vcmp.eq.s32.totalorder %v4092_v43, %v3457_v58  ;;  %v4094_v47 = vld [vmem:[#allocation26_spill] sm:$0xff]  ;;  %v4096_v60 = vld [vmem:[#allocation51_spill] sm:$0xff] }
 0x10a   :  { %vm156_vm0 = vcmp.eq.s32.totalorder %v4094_v47, %v3457_v58  ;;  %vm2353_vm2 = vmpackc.low %vm96_vm15, %vm92_vm14 }
 0x10b   :  { %1785 = vst [vmem:[%s3860_s2 + $0x40] sm:$0xff] %v1769_v37  ;;  %2354 = vmatpush.bf16.msk.msrb.mxu0 %vm2353_vm2, %v3995_v59  ;;  %vm2369_vm3 = vmpackc.low %vm160_vm1, %vm156_vm0  ;;  %v4098_v37 = vld [vmem:[#allocation36_spill] sm:$0xff] }
 0x10c   :  { %v1235_v48 = vpop.f32.mrf.mxu2  ;;  %v3632_v23 = vpop.f32.mrf.mxu0  ;;  %2370 = vmatpush.bf16.msk.msrb.mxu1 %vm2369_vm3, %v3995_v59  ;;  %vm216_vm5 = vcmp.eq.s32.totalorder %v4098_v37, %v3457_v58 }
 0x10d   :  { %v1236_v24 = vadd.f32 %v1235_v48, %v1197_v15  ;;  %v3634_v2 = vpop.f32.mrf.mxu1  ;;  %v4100_v15 = vld [vmem:[#allocation38_spill] sm:$0xff]  ;;  %vm2387_vm8 = vmpackc.low %vm216_vm5, %vm212_vm4  ;;  %v4102_v48 = vld [vmem:[#allocation32_spill] sm:$0xff] }
 0x10e   :  { %v1274_v38 = vpop.f32.mrf.mxu3  ;;  %vm280_vm7 = vcmp.eq.s32.totalorder %v4100_v15, %v3457_v58  ;;  %vm88_vm10 = vcmp.eq.s32.totalorder %v4102_v48, %v3457_v58  ;;  %2388 = vmatpush.bf16.msk.msrb.mxu2 %vm2387_vm8, %v3995_v59  ;;  %v1326_v37 = vadd.f32 %v3634_v2, %v3632_v23 }
 0x10f   :  { %v1275_v34 = vadd.f32 %v1274_v38, %v1236_v24  ;;  %1451 = vmatmul.bf16.gmra.mxu0 %v4073_v29  ;;  %v4103_v24 = vld [vmem:[#allocation33_spill] sm:$0xff]  ;;  %v4104_v38 = vld [vmem:[#allocation34_spill] sm:$0xff]  ;;  %vm2403_vm13 = vmpackc.low %vm280_vm7, %vm276_vm6 }
 0x110   :  { %1490 = vmatmul.bf16.gmra.mxu1 %v4077_v52  ;;  %vm148_vm11 = vcmp.eq.s32.totalorder %v4103_v24, %v3457_v58  ;;  %vm152_vm12 = vcmp.eq.s32.totalorder %v4104_v38, %v3457_v58  ;;  %2404 = vmatpush.bf16.msk.msrb.mxu3 %vm2403_vm13, %v3995_v59  ;;  %vm2355_vm14 = vmpackc.low %vm88_vm10, %vm84_vm9  ;;  %v4105_v58 = vld [vmem:[#allocation52_spill] sm:$0xff] }
 0x111   :  { %v1773_v41 = vadd.f32 %v1757_v33, %v1275_v34  ;;  %1529 = vmatmul.bf16.gmra.mxu2 %v4079_v32  ;;  %2356 = vmatpush.bf16.msk.msrb.mxu0 %vm2355_vm14, %v3995_v59  ;;  %vm2371_vm15 = vmpackc.low %vm152_vm12, %vm148_vm11 }
 0x112   :  { %2372 = vmatpush.bf16.msk.msrb.mxu1 %vm2371_vm15, %v3995_v59 }
 0x113   :  { %1568 = vmatmul.bf16.gmra.mxu3 %v4080_v42  ;;  %1789 = vst [vmem:[%s3860_s2 + $0x60] sm:$0xff] %v1773_v41 }
 0x114   :  { %v3661_v9 = vpop.f32.mrf.mxu2  ;;  %v3663_v10 = vpop.f32.mrf.mxu0 }
 0x115   :  { %v3668_v12 = vpop.f32.mrf.mxu1  ;;  %v1365_v48 = vadd.f32 %v3661_v9, %v1326_v37 }
 0x116   :  { %v3666_v31 = vpop.f32.mrf.mxu3 }
 0x11c   :  { %v3680_v40 = vpop.f32.mrf.mxu2  ;;  %v3682_v4 = vpop.f32.mrf.mxu0 }
 0x11d   :  { %v3687_v25 = vpop.f32.mrf.mxu1 }
 0x11e   :  { %v3685_v3 = vpop.f32.mrf.mxu3 }
 0x11f   :  { %1456 = vmatmul.bf16.gmra.mxu0 %v4089_v26 }
 0x120   :  { %1495 = vmatmul.bf16.gmra.mxu1 %v4090_v27 }
 0x121   :  { %1534 = vmatmul.bf16.gmra.mxu2 %v4091_v28 }
 0x123   :  { %1573 = vmatmul.bf16.gmra.mxu3 %v4096_v60 }
 0x124   :  { %v3702_v51 = vpop.f32.mrf.mxu2  ;;  %v3704_v53 = vpop.f32.mrf.mxu0 }
 0x125   :  { %v3709_v6 = vpop.f32.mrf.mxu1 }
 0x126   :  { %v3707_v5 = vpop.f32.mrf.mxu3 }
 0x12c   :  { %v3728_v33 = vpop.f32.mrf.mxu2  ;;  %v1296_v34 = vpop.f32.mrf.mxu0 }
 0x12d   :  { %v1335_v30 = vpop.f32.mrf.mxu1 }
 0x12e   :  { %v3731_v57 = vpop.f32.mrf.mxu3  ;;  %v1336_v47 = vadd.f32 %v1335_v30, %v1296_v34 }
 0x12f   :  { %1461 = vmatmul.bf16.gmra.mxu0 %v3185_v63 }
 0x130   :  { %1500 = vmatmul.bf16.gmra.mxu1 %v3193_v56 }
 0x131   :  { %1539 = vmatmul.bf16.gmra.mxu2 %v4105_v58 }
 0x133   :  { %1578 = vmatmul.bf16.gmra.mxu3 %v4106_v35 }
 0x134   :  { %v1374_v36 = vpop.f32.mrf.mxu2  ;;  %v1298_v41 = vpop.f32.mrf.mxu0 }
 0x135   :  { %v1337_v39 = vpop.f32.mrf.mxu1  ;;  %v1375_v22 = vadd.f32 %v1374_v36, %v1336_v47 }
 0x136   :  { %v1413_v44 = vpop.f32.mrf.mxu3  ;;  %v1338_v23 = vadd.f32 %v1337_v39, %v1298_v41 }
 0x137   :  { %v1414_v38 = vadd.f32 %v1413_v44, %v1375_v22 }
 0x13c   :  { %v1376_v54 = vpop.f32.mrf.mxu2  ;;  %v1301_v8 = vpop.f32.mrf.mxu0 }
 0x13d   :  { %v1340_v46 = vpop.f32.mrf.mxu1  ;;  %v1377_v47 = vadd.f32 %v1376_v54, %v1338_v23 }
 0x13e   :  { %v1415_v7 = vpop.f32.mrf.mxu3 }
 0x13f   :  { %1466 = vmatmul.bf16.gmra.mxu0 %v4107_v14  ;;  %v1416_v37 = vadd.f32 %v1415_v7, %v1377_v47 }
 0x140   :  { %1505 = vmatmul.bf16.gmra.mxu1 %v3262_v19 }
 0x141   :  { %1544 = vmatmul.bf16.gmra.mxu2 %v3264_v18 }
 0x143   :  { %1583 = vmatmul.bf16.gmra.mxu3 %v3266_v17  ;;  %v1404_v17 = vadd.f32 %v3666_v31, %v1365_v48 }
 0x144   :  { %v1379_v59 = vpop.f32.mrf.mxu2  ;;  %v1303_v16 = vpop.f32.mrf.mxu0 }
 0x145   :  { %v1342_v55 = vpop.f32.mrf.mxu1 }
 0x146   :  { %v1418_v43 = vpop.f32.mrf.mxu3 }
 0x14c   :  { %v1381_v62 = vpop.f32.mrf.mxu2  ;;  %v1306_v21 = vpop.f32.mrf.mxu0 }
 0x14d   :  { %v1345_v15 = vpop.f32.mrf.mxu1 }
 0x14e   :  { %v1420_v49 = vpop.f32.mrf.mxu3  ;;  %v1346_v24 = vadd.f32 %v1345_v15, %v1306_v21 }
 0x14f   :  { %1597 = vmatmul.bf16.vlgmr.msrb.gmra.mxu0 %v2841_v45  ;;  %v1328_v45 = vadd.f32 %v3668_v12, %v3663_v10  ;;  %v1331_v10 = vadd.f32 %v3687_v25, %v3682_v4 }
 0x150   :  { %1636 = vmatmul.bf16.vlgmr.msrb.gmra.mxu1 %v2862_v61  ;;  %v1746_v61 = vadd.f32 %v1414_v38, %v1404_v17 }
 0x151   :  { %1675 = vmatmul.bf16.vlgmr.msrb.gmra.mxu2 %v4028_v20  ;;  %v1367_v21 = vadd.f32 %v3680_v40, %v1328_v45 }
 0x153   :  { %1714 = vmatmul.bf16.vlgmr.msrb.gmra.mxu3 %v4029_v1  ;;  %v1341_v1 = vadd.f32 %v1340_v46, %v1301_v8  ;;  %v1406_v39 = vadd.f32 %v3685_v3, %v1367_v21  ;;  %v1370_v8 = vadd.f32 %v3702_v51, %v1331_v10  ;;  %v1333_v51 = vadd.f32 %v3709_v6, %v3704_v53 }
 0x154   :  { %v1384_v34 = vpop.f32.mrf.mxu2  ;;  %v1308_v30 = vpop.f32.mrf.mxu0 }
 0x155   :  { %v1385_v2 = vadd.f32 %v1384_v34, %v1346_v24  ;;  %v1347_v36 = vpop.f32.mrf.mxu1  ;;  %v1750_v54 = vadd.f32 %v1416_v37, %v1406_v39  ;;  %v1380_v40 = vadd.f32 %v1379_v59, %v1341_v1  ;;  %v1409_v59 = vadd.f32 %v3707_v5, %v1370_v8 }
 0x156   :  { %v1423_v18 = vpop.f32.mrf.mxu3  ;;  %v1348_v31 = vadd.f32 %v1347_v36, %v1308_v30 }
 0x157   :  { %v1424_v9 = vadd.f32 %v1423_v18, %v1385_v2  ;;  %v1419_v3 = vadd.f32 %v1418_v43, %v1380_v40 }
 0x159   :  { %v1762_v20 = vadd.f32 %v1746_v61, %v1424_v9  ;;  %v1754_v24 = vadd.f32 %v1419_v3, %v1409_v59 }
 0x15b   :  { %1778 = vst [vmem:[%s3860_s2 + $0x8] sm:$0xff] %v1762_v20 }
 0x15c   :  { %v1386_v41 = vpop.f32.mrf.mxu2  ;;  %v1311_v44 = vpop.f32.mrf.mxu0 }
 0x15d   :  { %v1387_v17 = vadd.f32 %v1386_v41, %v1348_v31  ;;  %v1350_v18 = vpop.f32.mrf.mxu1 }
 0x15e   :  { %v1425_v12 = vpop.f32.mrf.mxu3  ;;  %v1351_v46 = vadd.f32 %v1350_v18, %v1311_v44 }
 0x15f   :  { %v1426_v15 = vadd.f32 %v1425_v12, %v1387_v17  ;;  %1602 = vmatmul.bf16.gmra.mxu0 %v2976_v0  ;;  %v1343_v0 = vadd.f32 %v1342_v55, %v1303_v16  ;;  %v4108_v17 = vld [vmem:[#allocation55_spill] sm:$0xff] }
 0x160   :  { %1641 = vmatmul.bf16.gmra.mxu1 %v4062_v11 }
 0x161   :  { %v1766_v7 = vadd.f32 %v1750_v54, %v1426_v15  ;;  %1680 = vmatmul.bf16.gmra.mxu2 %v4063_v13  ;;  %v1382_v13 = vadd.f32 %v1381_v62, %v1343_v0 }
 0x163   :  { %1719 = vmatmul.bf16.gmra.mxu3 %v4064_v50  ;;  %1782 = vst [vmem:[%s3860_s2 + $0x28] sm:$0xff] %v1766_v7  ;;  %v1372_v50 = vadd.f32 %v3728_v33, %v1333_v51  ;;  %v1421_v34 = vadd.f32 %v1420_v49, %v1382_v13 }
 0x164   :  { %v1389_v4 = vpop.f32.mrf.mxu2  ;;  %v1313_v25 = vpop.f32.mrf.mxu0 }
 0x165   :  { %v1390_v22 = vadd.f32 %v1389_v4, %v1351_v46  ;;  %v1352_v48 = vpop.f32.mrf.mxu1  ;;  %v1411_v55 = vadd.f32 %v3731_v57, %v1372_v50 }
 0x166   :  { %v1428_v11 = vpop.f32.mrf.mxu3  ;;  %v1353_v30 = vadd.f32 %v1352_v48, %v1313_v25 }
 0x167   :  { %v1429_v38 = vadd.f32 %v1428_v11, %v1390_v22  ;;  %v1758_v53 = vadd.f32 %v1421_v34, %v1411_v55 }
 0x169   :  { %v1770_v43 = vadd.f32 %v1754_v24, %v1429_v38 }
 0x16b   :  { %1786 = vst [vmem:[%s3860_s2 + $0x48] sm:$0xff] %v1770_v43 }
 0x16c   :  { %v1391_v5 = vpop.f32.mrf.mxu2  ;;  %v1442_v16 = vpop.f32.mrf.mxu0 }
 0x16d   :  { %v1392_v23 = vadd.f32 %v1391_v5, %v1353_v30  ;;  %v1481_v36 = vpop.f32.mrf.mxu1 }
 0x16e   :  { %v1430_v2 = vpop.f32.mrf.mxu3  ;;  %v1482_v15 = vadd.f32 %v1481_v36, %v1442_v16 }
 0x16f   :  { %v1431_v6 = vadd.f32 %v1430_v2, %v1392_v23  ;;  %1607 = vmatmul.bf16.gmra.mxu0 %v4073_v29 }
 0x170   :  { %1646 = vmatmul.bf16.gmra.mxu1 %v4077_v52 }
 0x171   :  { %v1774_v33 = vadd.f32 %v1758_v53, %v1431_v6  ;;  %1685 = vmatmul.bf16.gmra.mxu2 %v4079_v32 }
 0x173   :  { %1724 = vmatmul.bf16.gmra.mxu3 %v4080_v42  ;;  %1790 = vst [vmem:[%s3860_s2 + $0x68] sm:$0xff] %v1774_v33 }
 0x174   :  { %v1520_v62 = vpop.f32.mrf.mxu2  ;;  %v1444_v57 = vpop.f32.mrf.mxu0 }
 0x175   :  { %v1483_v45 = vpop.f32.mrf.mxu1  ;;  %v1521_v3 = vadd.f32 %v1520_v62, %v1482_v15 }
 0x176   :  { %v1559_v49 = vpop.f32.mrf.mxu3  ;;  %v1484_v51 = vadd.f32 %v1483_v45, %v1444_v57 }
 0x177   :  { %v1560_v59 = vadd.f32 %v1559_v49, %v1521_v3 }
 0x17c   :  { %v1522_v61 = vpop.f32.mrf.mxu2  ;;  %v3783_v47 = vpop.f32.mrf.mxu0 }
 0x17d   :  { %v3787_v29 = vpop.f32.mrf.mxu1  ;;  %v1523_v50 = vadd.f32 %v1522_v61, %v1484_v51 }
 0x17e   :  { %v3785_v9 = vpop.f32.mrf.mxu3  ;;  %v1487_v2 = vadd.f32 %v3787_v29, %v3783_v47 }
 0x17f   :  { %1612 = vmatmul.bf16.gmra.mxu0 %v4089_v26  ;;  %v1562_v23 = vadd.f32 %v3785_v9, %v1523_v50 }
 0x180   :  { %1651 = vmatmul.bf16.gmra.mxu1 %v4090_v27 }
 0x181   :  { %1690 = vmatmul.bf16.gmra.mxu2 %v4091_v28 }
 0x183   :  { %1729 = vmatmul.bf16.gmra.mxu3 %v4096_v60 }
 0x184   :  { %v3793_v52 = vpop.f32.mrf.mxu2  ;;  %v3795_v32 = vpop.f32.mrf.mxu0 }
 0x185   :  { %v3799_v21 = vpop.f32.mrf.mxu1  ;;  %v1526_v49 = vadd.f32 %v3793_v52, %v1487_v2 }
 0x186   :  { %v3797_v42 = vpop.f32.mrf.mxu3 }
 0x18c   :  { %v3801_v20 = vpop.f32.mrf.mxu2  ;;  %v1452_v37 = vpop.f32.mrf.mxu0 }
 0x18d   :  { %v1491_v26 = vpop.f32.mrf.mxu1 }
 0x18e   :  { %v3803_v1 = vpop.f32.mrf.mxu3  ;;  %v1492_v18 = vadd.f32 %v1491_v26, %v1452_v37 }
 0x18f   :  { %1617 = vmatmul.bf16.gmra.mxu0 %v3185_v63  ;;  %v4109_v63 = vld [vmem:[#allocation56_spill] sm:$0xff] }
 0x190   :  { %1656 = vmatmul.bf16.gmra.mxu1 %v3193_v56 }
 0x191   :  { %1695 = vmatmul.bf16.gmra.mxu2 %v4105_v58 }
 0x193   :  { %1734 = vmatmul.bf16.gmra.mxu3 %v4106_v35 }
 0x194   :  { %v1530_v27 = vpop.f32.mrf.mxu2  ;;  %v1454_v28 = vpop.f32.mrf.mxu0 }
 0x195   :  { %v1493_v31 = vpop.f32.mrf.mxu1  ;;  %v1531_v46 = vadd.f32 %v1530_v27, %v1492_v18  ;;  %v1565_v27 = vadd.f32 %v3797_v42, %v1526_v49 }
 0x196   :  { %v1569_v60 = vpop.f32.mrf.mxu3  ;;  %v1494_v0 = vadd.f32 %v1493_v31, %v1454_v28  ;;  %v1489_v31 = vadd.f32 %v3799_v21, %v3795_v32 }
 0x19c   :  { %v1532_v41 = vpop.f32.mrf.mxu2  ;;  %v1457_v44 = vpop.f32.mrf.mxu0 }
 0x19d   :  { %v1496_v10 = vpop.f32.mrf.mxu1  ;;  %v1533_v13 = vadd.f32 %v1532_v41, %v1494_v0 }
 0x19e   :  { %v1571_v39 = vpop.f32.mrf.mxu3  ;;  %v1497_v30 = vadd.f32 %v1496_v10, %v1457_v44 }
 0x19f   :  { %1622 = vmatmul.bf16.gmra.mxu0 %v4107_v14  ;;  %v1570_v14 = vadd.f32 %v1569_v60, %v1531_v46  ;;  %v1572_v34 = vadd.f32 %v1571_v39, %v1533_v13  ;;  %v1528_v39 = vadd.f32 %v3801_v20, %v1489_v31 }
 0x1a0   :  { %1661 = vmatmul.bf16.gmra.mxu1 %v3262_v19 }
 0x1a1   :  { %1700 = vmatmul.bf16.gmra.mxu2 %v4108_v17  ;;  %v1747_v24 = vadd.f32 %v1570_v14, %v1560_v59  ;;  %v1751_v33 = vadd.f32 %v1572_v34, %v1562_v23 }
 0x1a3   :  { %1739 = vmatmul.bf16.gmra.mxu3 %v4109_v63 }
 0x1a4   :  { %v1535_v56 = vpop.f32.mrf.mxu2  ;;  %v1459_v58 = vpop.f32.mrf.mxu0 }
 0x1a5   :  { %v1498_v35 = vpop.f32.mrf.mxu1  ;;  %v1536_v62 = vadd.f32 %v1535_v56, %v1497_v30 }
 0x1a6   :  { %v1574_v12 = vpop.f32.mrf.mxu3  ;;  %v1499_v47 = vadd.f32 %v1498_v35, %v1459_v58  ;;  %v1567_v58 = vadd.f32 %v3803_v1, %v1528_v39 }
 0x1a7   :  { %v1575_v37 = vadd.f32 %v1574_v12, %v1536_v62 }
 0x1a9   :  { %v1755_v41 = vadd.f32 %v1575_v37, %v1565_v27 }
 0x1ac   :  { %v1537_v54 = vpop.f32.mrf.mxu2  ;;  %v1462_v40 = vpop.f32.mrf.mxu0 }
 0x1ad   :  { %v1501_v7 = vpop.f32.mrf.mxu1  ;;  %v1538_v52 = vadd.f32 %v1537_v54, %v1499_v47 }
 0x1ae   :  { %v1576_v8 = vpop.f32.mrf.mxu3  ;;  %v1502_v4 = vadd.f32 %v1501_v7, %v1462_v40 }
 0x1af   :  { %v1577_v17 = vadd.f32 %v1576_v8, %v1538_v52 }
 0x1b1   :  { %v1759_v32 = vadd.f32 %v1577_v17, %v1567_v58 }
 0x1b4   :  { %v1540_v25 = vpop.f32.mrf.mxu2  ;;  %v1464_v19 = vpop.f32.mrf.mxu0 }
 0x1b5   :  { %v1541_v22 = vadd.f32 %v1540_v25, %v1502_v4  ;;  %v1503_v48 = vpop.f32.mrf.mxu1 }
 0x1b6   :  { %v1579_v11 = vpop.f32.mrf.mxu3  ;;  %v1504_v5 = vadd.f32 %v1503_v48, %v1464_v19 }
 0x1b7   :  { %v1580_v38 = vadd.f32 %v1579_v11, %v1541_v22 }
 0x1b9   :  { %v1763_v43 = vadd.f32 %v1747_v24, %v1580_v38 }
 0x1bb   :  { %1779 = vst [vmem:[%s3860_s2 + $0x10] sm:$0xff] %v1763_v43 }
 0x1bc   :  { %v1542_v16 = vpop.f32.mrf.mxu2  ;;  %v1467_v55 = vpop.f32.mrf.mxu0 }
 0x1bd   :  { %v1543_v36 = vadd.f32 %v1542_v16, %v1504_v5  ;;  %v1506_v6 = vpop.f32.mrf.mxu1 }
 0x1be   :  { %v1581_v53 = vpop.f32.mrf.mxu3  ;;  %v1507_v61 = vadd.f32 %v1506_v6, %v1467_v55 }
 0x1bf   :  { %v1582_v57 = vadd.f32 %v1581_v53, %v1543_v36 }
 0x1c1   :  { %v1767_v45 = vadd.f32 %v1751_v33, %v1582_v57 }
 0x1c3   :  { %1783 = vst [vmem:[%s3860_s2 + $0x30] sm:$0xff] %v1767_v45 }
 0x1c4   :  { %v1545_v26 = vpop.f32.mrf.mxu2  ;;  %v1469_v9 = vpop.f32.mrf.mxu0 }
 0x1c5   :  { %v1546_v29 = vadd.f32 %v1545_v26, %v1507_v61  ;;  %v1508_v60 = vpop.f32.mrf.mxu1 }
 0x1c6   :  { %v1584_v28 = vpop.f32.mrf.mxu3  ;;  %v1509_v63 = vadd.f32 %v1508_v60, %v1469_v9 }
 0x1c7   :  { %v1585_v44 = vadd.f32 %v1584_v28, %v1546_v29 }
 0x1c9   :  { %v1771_v10 = vadd.f32 %v1755_v41, %v1585_v44 }
 0x1cb   :  { %1787 = vst [vmem:[%s3860_s2 + $0x50] sm:$0xff] %v1771_v10 }
 0x1cc   :  { %v1547_v42 = vpop.f32.mrf.mxu2  ;;  %v1598_v56 = vpop.f32.mrf.mxu0 }
 0x1cd   :  { %v1548_v12 = vadd.f32 %v1547_v42, %v1509_v63  ;;  %v1637_v18 = vpop.f32.mrf.mxu1 }
 0x1ce   :  { %v1586_v35 = vpop.f32.mrf.mxu3  ;;  %v1638_v53 = vadd.f32 %v1637_v18, %v1598_v56 }
 0x1cf   :  { %v1587_v21 = vadd.f32 %v1586_v35, %v1548_v12 }
 0x1d1   :  { %v1775_v54 = vadd.f32 %v1759_v32, %v1587_v21 }
 0x1d3   :  { %1791 = vst [vmem:[%s3860_s2 + $0x70] sm:$0xff] %v1775_v54 }
 0x1d4   :  { %v1676_v20 = vpop.f32.mrf.mxu2  ;;  %v1600_v40 = vpop.f32.mrf.mxu0 }
 0x1d5   :  { %v1639_v8 = vpop.f32.mrf.mxu1  ;;  %v1677_v57 = vadd.f32 %v1676_v20, %v1638_v53 }
 0x1d6   :  { %v1715_v15 = vpop.f32.mrf.mxu3  ;;  %v1640_v28 = vadd.f32 %v1639_v8, %v1600_v40 }
 0x1d7   :  { %v1716_v26 = vadd.f32 %v1715_v15, %v1677_v57 }
 0x1dc   :  { %v1678_v7 = vpop.f32.mrf.mxu2  ;;  %v1603_v46 = vpop.f32.mrf.mxu0 }
 0x1dd   :  { %v1642_v4 = vpop.f32.mrf.mxu1  ;;  %v1679_v52 = vadd.f32 %v1678_v7, %v1640_v28 }
 0x1de   :  { %v1717_v3 = vpop.f32.mrf.mxu3  ;;  %v1643_v56 = vadd.f32 %v1642_v4, %v1603_v46 }
 0x1df   :  { %v1718_v42 = vadd.f32 %v1717_v3, %v1679_v52 }
 0x1e4   :  { %v1681_v14 = vpop.f32.mrf.mxu2  ;;  %v3834_v1 = vpop.f32.mrf.mxu0 }
 0x1e5   :  { %v3836_v19 = vpop.f32.mrf.mxu1  ;;  %v1682_v20 = vadd.f32 %v1681_v14, %v1643_v56 }
 0x1e6   :  { %v1720_v25 = vpop.f32.mrf.mxu3  ;;  %v1645_v4 = vadd.f32 %v3836_v19, %v3834_v1 }
 0x1ec   :  { %v3838_v59 = vpop.f32.mrf.mxu2  ;;  %v1608_v0 = vpop.f32.mrf.mxu0 }
 0x1ed   :  { %v1647_v11 = vpop.f32.mrf.mxu1 }
 0x1ee   :  { %v3840_v22 = vpop.f32.mrf.mxu3  ;;  %v1648_v23 = vadd.f32 %v1647_v11, %v1608_v0  ;;  %v1721_v0 = vadd.f32 %v1720_v25, %v1682_v20 }
 0x1f4   :  { %v1686_v48 = vpop.f32.mrf.mxu2  ;;  %v1610_v51 = vpop.f32.mrf.mxu0 }
 0x1f5   :  { %v1649_v13 = vpop.f32.mrf.mxu1  ;;  %v1687_v62 = vadd.f32 %v1686_v48, %v1648_v23 }
 0x1f6   :  { %v1725_v24 = vpop.f32.mrf.mxu3  ;;  %v1650_v9 = vadd.f32 %v1649_v13, %v1610_v51 }
 0x1f7   :  { %v1726_v45 = vadd.f32 %v1725_v24, %v1687_v62 }
 0x1f9   :  { %v1748_v60 = vadd.f32 %v1726_v45, %v1716_v26 }
 0x1fc   :  { %v1688_v38 = vpop.f32.mrf.mxu2  ;;  %v1613_v50 = vpop.f32.mrf.mxu0 }
 0x1fd   :  { %v1652_v34 = vpop.f32.mrf.mxu1  ;;  %v1689_v31 = vadd.f32 %v1688_v38, %v1650_v9  ;;  %v1684_v38 = vadd.f32 %v3838_v59, %v1645_v4 }
 0x1fe   :  { %v1727_v43 = vpop.f32.mrf.mxu3  ;;  %v1653_v10 = vadd.f32 %v1652_v34, %v1613_v50 }
 0x1ff   :  { %v1728_v39 = vadd.f32 %v1727_v43, %v1689_v31 }
 0x201   :  { %v1752_v32 = vadd.f32 %v1728_v39, %v1718_v42 }
 0x204   :  { %v1691_v30 = vpop.f32.mrf.mxu2  ;;  %v1615_v5 = vpop.f32.mrf.mxu0 }
 0x205   :  { %v1654_v55 = vpop.f32.mrf.mxu1  ;;  %v1692_v21 = vadd.f32 %v1691_v30, %v1653_v10  ;;  %v1723_v30 = vadd.f32 %v3840_v22, %v1684_v38 }
 0x206   :  { %v1730_v16 = vpop.f32.mrf.mxu3  ;;  %v1655_v11 = vadd.f32 %v1654_v55, %v1615_v5 }
 0x207   :  { %v1731_v8 = vadd.f32 %v1730_v16, %v1692_v21 }
 0x209   :  { %v1756_v48 = vadd.f32 %v1731_v8, %v1721_v0 }
 0x20c   :  { %v1693_v2 = vpop.f32.mrf.mxu2  ;;  %v1618_v36 = vpop.f32.mrf.mxu0 }
 0x20d   :  { %v1657_v33 = vpop.f32.mrf.mxu1  ;;  %v1694_v51 = vadd.f32 %v1693_v2, %v1655_v11 }
 0x20e   :  { %v1732_v6 = vpop.f32.mrf.mxu3  ;;  %v1658_v49 = vadd.f32 %v1657_v33, %v1618_v36 }
 0x20f   :  { %v1733_v43 = vadd.f32 %v1732_v6, %v1694_v51 }
 0x211   :  { %v1760_v1 = vadd.f32 %v1733_v43, %v1723_v30 }
 0x214   :  { %v1696_v61 = vpop.f32.mrf.mxu2  ;;  %v1620_v37 = vpop.f32.mrf.mxu0 }
 0x215   :  { %v1697_v27 = vadd.f32 %v1696_v61, %v1658_v49  ;;  %v1659_v29 = vpop.f32.mrf.mxu1 }
 0x216   :  { %v1735_v47 = vpop.f32.mrf.mxu3  ;;  %v1660_v17 = vadd.f32 %v1659_v29, %v1620_v37 }
 0x217   :  { %v1736_v41 = vadd.f32 %v1735_v47, %v1697_v27 }
 0x219   :  { %v1764_v44 = vadd.f32 %v1748_v60, %v1736_v41 }
 0x21b   :  { %1780 = vst [vmem:[%s3860_s2 + $0x18] sm:$0xff] %v1764_v44 }
 0x21c   :  { %v1698_v63 = vpop.f32.mrf.mxu2  ;;  %v1623_v35 = vpop.f32.mrf.mxu0 }
 0x21d   :  { %v1699_v58 = vadd.f32 %v1698_v63, %v1660_v17  ;;  %v1662_v18 = vpop.f32.mrf.mxu1 }
 0x21e   :  { %v1737_v12 = vpop.f32.mrf.mxu3  ;;  %v1663_v15 = vadd.f32 %v1662_v18, %v1623_v35 }
 0x21f   :  { %v1738_v54 = vadd.f32 %v1737_v12, %v1699_v58 }
 0x221   :  { %v1768_v40 = vadd.f32 %v1752_v32, %v1738_v54 }
 0x223   :  { %1784 = vst [vmem:[%s3860_s2 + $0x38] sm:$0xff] %v1768_v40 }
 0x224   :  { %v1701_v7 = vpop.f32.mrf.mxu2  ;;  %v1625_v13 = vpop.f32.mrf.mxu0 }
 0x225   :  { %v1702_v3 = vadd.f32 %v1701_v7, %v1663_v15  ;;  %v1664_v14 = vpop.f32.mrf.mxu1 }
 0x226   :  { %v1740_v46 = vpop.f32.mrf.mxu3  ;;  %v1665_v25 = vadd.f32 %v1664_v14, %v1625_v13 }
 0x227   :  { %v1741_v24 = vadd.f32 %v1740_v46, %v1702_v3 }
 0x229   :  { %v1772_v50 = vadd.f32 %v1756_v48, %v1741_v24 }
 0x22b   :  { %1788 = vst [vmem:[%s3860_s2 + $0x58] sm:$0xff] %v1772_v50 }
 0x22c   :  { %v1703_v34 = vpop.f32.mrf.mxu2 }
 0x22d   :  { %v1704_v5 = vadd.f32 %v1703_v34, %v1665_v25 }
 0x22e   :  { %v1742_v16 = vpop.f32.mrf.mxu3 }
 0x22f   :  { %v1743_v19 = vadd.f32 %v1742_v16, %v1704_v5 }
 0x231   :  { %v1776_v55 = vadd.f32 %v1760_v1, %v1743_v19 }
 0x233   :  { %1792 = vst [vmem:[%s3860_s2 + $0x78] sm:$0xff] %v1776_v55 }

</bundles_post_ra>
